<compile_context>
chip_gen: v7x
topology: tpu7x:2x2x1
jax: 0.10.0
libtpu: 0.0.40
codegen_flags: <defaults>
</compile_context>

<pallas_src>
import functools

import numpy as np
import jax
import jax.numpy as jnp
from jax.experimental import pallas as pl
from jax.experimental.pallas import tpu as pltpu

# ---------------------------------------------------------------------------
# configuration (matches Dense3D.__init__ defaults)
# ---------------------------------------------------------------------------
BLOCK_CONFIG = (4, 8, 12, 8)
GROWTH_RATE = 32
NUM_INIT_FEATURES = 64
BN_SIZE = 4
GRU_HIDDEN = 256

MAX_TK = 2048          # max K tile for the matmul kernel
MAX_TN = 512           # max N tile for the matmul kernel
PREF_TM = 256          # preferred M tile
POOL_BM = 512          # row tile (of 128-lane rows) for pooling kernels


def _round_up(x, m):
    return (x + m - 1) // m * m


def _choose_tm(m):
    """Pad M up to a fixed preferred tile instead of searching odd divisors."""
    mp = _round_up(m, 16)
    if mp <= PREF_TM:
        return mp, mp
    mp = _round_up(m, PREF_TM)
    return PREF_TM, mp


def _choose_k_tiling(k):
    """Return (Kp, tk): padded K and K tile (multiple of 128 dividing Kp)."""
    kp = _round_up(k, 128)
    if kp <= MAX_TK:
        return kp, kp
    for d in range(MAX_TK, 127, -128):
        if kp % d == 0 and d >= 512:
            return kp, d
    kp = _round_up(k, MAX_TK)          # poor factorization: pad to MAX_TK grid
    return kp, MAX_TK


def _choose_n_tiling(n):
    """Return (Np, tn): padded N and N tile. Single tile whenever Np <= MAX_TN
    so BN prologues are not recomputed per N block."""
    np_ = _round_up(n, 128)
    if np_ <= MAX_TN:
        return np_, np_
    for tn in range(MAX_TN, 127, -128):
        if np_ % tn == 0:
            return np_, tn
    np_ = _round_up(n, MAX_TN)
    return np_, MAX_TN


# ---------------------------------------------------------------------------
# Pallas kernel: fused (BN+ReLU prologue) -> bf16 matmul -> (BN+ReLU epilogue)
# ---------------------------------------------------------------------------
def _make_matmul_kernel(pro, pro_relu, epi, epi_relu):
    def kernel(*refs):
        i = 0
        a_ref = refs[i]; i += 1
        if pro:
            ps_ref, pt_ref = refs[i], refs[i + 1]; i += 2
        b_ref = refs[i]; i += 1
        if epi:
            es_ref, et_ref = refs[i], refs[i + 1]; i += 2
        o_ref, acc_ref = refs[i], refs[i + 1]

        @pl.when(pl.program_id(2) == 0)
        def _():
            acc_ref[...] = jnp.zeros_like(acc_ref)

        a = a_ref[...]
        if pro:
            # per-input-channel BatchNorm (+ ReLU) kept in bf16 (MXU operand
            # is bf16 anyway; avoids the f32 round trip of the A tile).
            a = a * ps_ref[...] + pt_ref[...]
            if pro_relu:
                a = jnp.maximum(a, 0.0)
        acc_ref[...] += jnp.dot(a, b_ref[...],
                                preferred_element_type=jnp.float32)

        @pl.when(pl.program_id(2) == pl.num_programs(2) - 1)
        def _():
            y = acc_ref[...]
            if epi:
                y = y * es_ref[...] + et_ref[...]
                if epi_relu:
                    y = jnp.maximum(y, 0.0)
            o_ref[...] = y.astype(o_ref.dtype)

    return kernel


@functools.partial(
    jax.jit,
    static_argnames=("pro", "pro_relu", "epi", "epi_relu", "out_dtype",
                     "tm", "tn", "tk"))
def _fused_matmul_padded(a, b, ps, pt, es, et, *, pro, pro_relu, epi, epi_relu,
                         out_dtype, tm, tn, tk):
    m, k = a.shape
    _, n = b.shape
    grid = (m // tm, n // tn, k // tk)

    in_specs = [pl.BlockSpec((tm, tk), lambda i, j, kk: (i, kk))]
    inputs = [a]
    if pro:
        in_specs += [pl.BlockSpec((1, tk), lambda i, j, kk: (0, kk))] * 2
        inputs += [ps, pt]
    in_specs.append(pl.BlockSpec((tk, tn), lambda i, j, kk: (kk, j)))
    inputs.append(b)
    if epi:
        in_specs += [pl.BlockSpec((1, tn), lambda i, j, kk: (0, j))] * 2
        inputs += [es, et]

    return pl.pallas_call(
        _make_matmul_kernel(pro, pro_relu, epi, epi_relu),
        out_shape=jax.ShapeDtypeStruct((m, n), out_dtype),
        grid_spec=pltpu.PrefetchScalarGridSpec(
            num_scalar_prefetch=0,
            grid=grid,
            in_specs=in_specs,
            out_specs=pl.BlockSpec((tm, tn), lambda i, j, kk: (i, j)),
            scratch_shapes=[pltpu.VMEM((tm, tn), jnp.float32)]),
        compiler_params=pltpu.CompilerParams(
            dimension_semantics=("parallel", "parallel", "arbitrary")),
    )(*inputs)


def apply_matmul(a, packed, out_dtype=jnp.bfloat16):
    """a: (M, K) activation; packed: pre-padded bf16 weight + folded BN terms."""
    m, k = a.shape
    kp, np_ = packed["w"].shape
    tm, mp = _choose_tm(m)
    a = a.astype(jnp.bfloat16)
    if (mp, kp) != (m, k):
        a = jnp.pad(a, ((0, mp - m), (0, kp - k)))
    pro = "ps" in packed
    epi = "es" in packed
    out = _fused_matmul_padded(
        a, packed["w"],
        packed.get("ps"), packed.get("pt"),
        packed.get("es"), packed.get("et"),
        pro=pro, pro_relu=packed["pro_relu"],
        epi=epi, epi_relu=packed["epi_relu"],
        out_dtype=out_dtype, tm=tm, tn=packed["tn"], tk=packed["tk"])
    n = packed["n"]
    if (mp, np_) != (m, n):
        out = out[:m, :n]
    return out


# ---------------------------------------------------------------------------
# Pallas kernels: pooling (window reduction, lane-dense layout)
# ---------------------------------------------------------------------------
def _pool_max_kernel(x_ref, o_ref):
    # max is exact in bf16 -> no f32 round trip in this memory-bound kernel
    o_ref[...] = jnp.max(x_ref[...], axis=0)


def _pool_mean_kernel(x_ref, o_ref):
    o_ref[...] = jnp.mean(x_ref[...].astype(jnp.float32), axis=0).astype(o_ref.dtype)


@functools.partial(jax.jit, static_argnames=("mode",))
def _pool_padded(flat, mode):
    wn, rows, lanes = flat.shape
    kernel = _pool_max_kernel if mode == "max" else _pool_mean_kernel
    return pl.pallas_call(
        kernel,
        out_shape=jax.ShapeDtypeStruct((rows, lanes), jnp.bfloat16),
        grid=(rows // POOL_BM,),
        in_specs=[pl.BlockSpec((wn, POOL_BM, lanes), lambda i: (0, i, 0))],
        out_specs=pl.BlockSpec((POOL_BM, lanes), lambda i: (i, 0)),
        compiler_params=pltpu.CompilerParams(
            dimension_semantics=("parallel",)),
    )(flat)


def _pool_reduce(stacked, mode):
    """stacked: (windows, M, C) bf16 -> (M, C) bf16, reduced over windows.
    Flattened so the kernel sees a lane-dense (rows, 128) layout."""
    wn, m, c = stacked.shape
    total = m * c
    tot_p = _round_up(total, POOL_BM * 128)
    pad_val = float("-inf") if mode == "max" else 0.0
    flat = stacked.reshape(wn, total)
    if tot_p != total:
        flat = jnp.pad(flat, ((0, 0), (0, tot_p - total)),
                       constant_values=pad_val)
    flat = flat.reshape(wn, tot_p // 128, 128)
    out = _pool_padded(flat, mode)
    return out.reshape(-1)[:total].reshape(m, c)


def maxpool3d_1x3x3(x):
    """MaxPool3d(kernel=(1,3,3), stride=(1,2,2), padding=(0,1,1))."""
    b, t, h, w, c = x.shape
    ho = (h + 2 - 3) // 2 + 1
    wo = (w + 2 - 3) // 2 + 1
    xp = jnp.pad(x, ((0, 0), (0, 0), (1, 1), (1, 1), (0, 0)),
                 constant_values=-jnp.inf)
    wins = []
    for kh in range(3):
        for kw in range(3):
            wins.append(xp[:, :, kh:kh + 2 * ho - 1:2, kw:kw + 2 * wo - 1:2, :])
    stacked = jnp.stack(wins, 0).reshape(9, b * t * ho * wo, c)
    return _pool_reduce(stacked, "max").reshape(b, t, ho, wo, c)


def avgpool3d_1x2x2(x):
    """AvgPool3d(kernel=(1,2,2), stride=(1,2,2))."""
    b, t, h, w, c = x.shape
    ho, wo = h // 2, w // 2
    wins = []
    for kh in range(2):
        for kw in range(2):
            wins.append(x[:, :, kh:kh + 2 * ho - 1:2, kw:kw + 2 * wo - 1:2, :])
    stacked = jnp.stack(wins, 0).reshape(4, b * t * ho * wo, c)
    return _pool_reduce(stacked, "mean").reshape(b, t, ho, wo, c)


# ---------------------------------------------------------------------------
# im2col (glue) for Conv3d
# ---------------------------------------------------------------------------
def _im2col(x, ksize, stride, padding):
    b, t, h, w, cin = x.shape
    kt, kh, kw = ksize
    st, sh, sw = stride
    pt_, ph, pw = padding
    to = (t + 2 * pt_ - kt) // st + 1
    ho = (h + 2 * ph - kh) // sh + 1
    wo = (w + 2 * pw - kw) // sw + 1
    xp = jnp.pad(x, ((0, 0), (pt_, pt_), (ph, ph), (pw, pw), (0, 0)))
    cols = []
    for it in range(kt):
        for ih in range(kh):
            for iw in range(kw):
                cols.append(xp[:,
                               it:it + st * (to - 1) + 1:st,
                               ih:ih + sh * (ho - 1) + 1:sh,
                               iw:iw + sw * (wo - 1) + 1:sw, :])
    patches = jnp.concatenate(cols, axis=-1)       # (B,To,Ho,Wo, taps*Cin)
    return patches.reshape(b * to * ho * wo, kt * kh * kw * cin), (b, to, ho, wo)


# ---------------------------------------------------------------------------
# Pallas kernel: GRU recurrence (PyTorch gate ordering r, z, n)
# ---------------------------------------------------------------------------
def _gru_recurrence_kernel(gi_ref, whh_ref, bih_ref, bhh_ref, out_ref, h_ref):
    t_len, b, g = gi_ref.shape
    h_dim = g // 3
    h_ref[...] = jnp.zeros_like(h_ref)

    @pl.loop(0, t_len, unroll=True)
    def _(t):
        h = h_ref[...]
        gi = gi_ref[t] + bih_ref[...]                       # (B, 3H) f32
        # bf16 operands, f32 accumulation for the recurrent matmul
        gh = jnp.dot(h.astype(jnp.bfloat16), whh_ref[...],
                     preferred_element_type=jnp.float32) + bhh_ref[...]
        r = jax.nn.sigmoid(gi[:, :h_dim] + gh[:, :h_dim])
        z = jax.nn.sigmoid(gi[:, h_dim:2 * h_dim] + gh[:, h_dim:2 * h_dim])
        n = jnp.tanh(gi[:, 2 * h_dim:] + r * gh[:, 2 * h_dim:])
        h = (1.0 - z) * n + z * h
        h_ref[...] = h
        out_ref[t] = h


@jax.jit
def _gru_recurrence(gi, whh_t, bih, bhh):
    t_len, b, g = gi.shape
    h_dim = g // 3
    vmem = pl.BlockSpec(memory_space=pltpu.MemorySpace.VMEM)
    return pl.pallas_call(
        _gru_recurrence_kernel,
        out_shape=jax.ShapeDtypeStruct((t_len, b, h_dim), jnp.float32),
        in_specs=[vmem, vmem, vmem, vmem],
        out_specs=vmem,
        scratch_shapes=[pltpu.VMEM((b, h_dim), jnp.float32)],
    )(gi, whh_t, bih, bhh)


def bigru(x, gp):
    """x: (B, T, F).  Both directions' input projections share one matmul."""
    b, t, f = x.shape
    h = GRU_HIDDEN
    gi_all = apply_matmul(x.reshape(b * t, f), gp["w_ih_cat"],
                          out_dtype=jnp.float32)            # (B*T, 6H)
    gi_all = gi_all.reshape(b, t, 6 * h)
    outs = []
    for i, rev in ((0, False), (1, True)):
        d = gp["dirs"][i]
        gi = gi_all[:, :, i * 3 * h:(i + 1) * 3 * h].transpose(1, 0, 2)  # (T,B,3H)
        if rev:
            gi = gi[::-1]
        hseq = _gru_recurrence(gi, d["w_hh_t"], d["b_ih"], d["b_hh"])
        if rev:
            hseq = hseq[::-1]
        outs.append(hseq.transpose(1, 0, 2))                # (B, T, H)
    return jnp.concatenate(outs, axis=-1)


# ---------------------------------------------------------------------------
# Pallas kernel: Linear(512, 2) + log_softmax(-1)
# ---------------------------------------------------------------------------
def _fc_logsoftmax_kernel(x_ref, w_ref, b_ref, o_ref):
    y = jnp.dot(x_ref[...], w_ref[...],
                preferred_element_type=jnp.float32) + b_ref[...]
    m = jnp.max(y, axis=-1, keepdims=True)
    e = jnp.exp(y - m)
    o_ref[...] = (y - m) - jnp.log(jnp.sum(e, axis=-1, keepdims=True))


@jax.jit
def _fc_logsoftmax(x2d, w_t, b2d):
    m = x2d.shape[0]
    n = w_t.shape[1]
    vmem = pl.BlockSpec(memory_space=pltpu.MemorySpace.VMEM)
    return pl.pallas_call(
        _fc_logsoftmax_kernel,
        out_shape=jax.ShapeDtypeStruct((m, n), jnp.float32),
        in_specs=[vmem, vmem, vmem],
        out_specs=vmem,
    )(x2d, w_t, b2d)


def fc_log_softmax(x, w_t, b2d):
    # Dropout(0.5) is identity at inference; then Linear(512, 2) + log_softmax.
    b, t, f = x.shape
    x2 = x.reshape(b * t, f).astype(jnp.float32)
    m = b * t
    mp = _round_up(m, 8)
    if mp != m:
        x2 = jnp.pad(x2, ((0, mp - m), (0, 0)))
    y = _fc_logsoftmax(x2, w_t, b2d)
    return y[:m].reshape(b, t, -1)


# ---------------------------------------------------------------------------
# Dense3D forward (consumes prepared/packed parameters)
# ---------------------------------------------------------------------------
def dense3d_forward(x_ncdhw, pp):
    # PyTorch input layout: (B, 3, T, H, W)  ->  channels-last (B, T, H, W, 3)
    x = jnp.transpose(x_ncdhw, (0, 2, 3, 4, 1)).astype(jnp.bfloat16)

    # features.conv0 (+ fused norm0/relu0 epilogue) then pool0
    a0, (b, to, ho, wo) = _im2col(x, (5, 7, 7), (1, 2, 2), (2, 3, 3))
    x = apply_matmul(a0, pp["conv0"]).reshape(b, to, ho, wo, -1)
    x = maxpool3d_1x3x3(x)

    # dense blocks + transitions
    for bi, num_layers in enumerate(BLOCK_CONFIG):
        block = pp["denseblock%d" % (bi + 1)]
        for li in range(num_layers):
            lp = block["denselayer%d" % (li + 1)]
            bx, t, h, w, c = x.shape
            # norm1+relu1 (prologue) -> conv1 1x1x1 -> norm2+relu2 (epilogue)
            y1 = apply_matmul(x.reshape(-1, c), lp["conv1"])
            y1 = y1.reshape(bx, t, h, w, -1)
            # conv2 3x3x3 (zero-padded im2col of the already-normalized y1)
            a2, _ = _im2col(y1, (3, 3, 3), (1, 1, 1), (1, 1, 1))
            y2 = apply_matmul(a2, lp["conv2"]).reshape(bx, t, h, w, -1)
            # drop_rate == 0 -> no dropout applied
            x = jnp.concatenate([x, y2], axis=-1)
        if bi != len(BLOCK_CONFIG) - 1:
            tp = pp["transition%d" % (bi + 1)]
            bx, t, h, w, c = x.shape
            y = apply_matmul(x.reshape(-1, c), tp["conv"])
            x = avgpool3d_1x2x2(y.reshape(bx, t, h, w, -1))

    # norm5 (no ReLU) is folded into the gru1 input-projection prologue.
    bx, t, h, w, c = x.shape
    # (B,T,H,W,C) -> (B,T,C,H,W) -> (B,T,C*H*W)   (== permute(0,2,1,3,4).view)
    f2 = jnp.transpose(x, (0, 1, 4, 2, 3)).reshape(bx, t, c * h * w)

    f2 = bigru(f2, pp["gru1"])
    f2 = bigru(f2, pp["gru2"])
    return fc_log_softmax(f2, pp["fc_wt"], pp["fc_b"])   # (B, T, 2)


# ---------------------------------------------------------------------------
# Parameter construction (PyTorch layouts) and one-time packing for inference
# ---------------------------------------------------------------------------
def build_params(seed=0):
    keys = iter(jax.random.split(jax.random.PRNGKey(seed), 1024))
    nk = lambda: next(keys)

    def conv_w(cout, cin, kt, kh, kw):
        fan_in = cin * kt * kh * kw
        return jax.random.normal(nk(), (cout, cin, kt, kh, kw),
                                 jnp.float32) * np.sqrt(2.0 / fan_in)

    def bn_p(c):
        return dict(
            gamma=1.0 + 0.1 * jax.random.normal(nk(), (c,), jnp.float32),
            beta=0.1 * jax.random.normal(nk(), (c,), jnp.float32),
            mean=0.1 * jax.random.normal(nk(), (c,), jnp.float32),
            var=0.5 + jax.random.uniform(nk(), (c,), jnp.float32),
        )

    def gru_dir(inp, hid):
        s = 1.0 / np.sqrt(hid)
        u = lambda shape: jax.random.uniform(nk(), shape, jnp.float32, -s, s)
        return dict(w_ih=u((3 * hid, inp)), w_hh=u((3 * hid, hid)),
                    b_ih=u((3 * hid,)), b_hh=u((3 * hid,)))

    params = {}
    params["conv0"] = conv_w(NUM_INIT_FEATURES, 3, 5, 7, 7)
    params["norm0"] = bn_p(NUM_INIT_FEATURES)
    nfeat = NUM_INIT_FEATURES
    for bi, num_layers in enumerate(BLOCK_CONFIG):
        block = {}
        for li in range(num_layers):
            cin = nfeat + li * GROWTH_RATE
            block["denselayer%d" % (li + 1)] = dict(
                norm1=bn_p(cin),
                conv1=conv_w(BN_SIZE * GROWTH_RATE, cin, 1, 1, 1),
                norm2=bn_p(BN_SIZE * GROWTH_RATE),
                conv2=conv_w(GROWTH_RATE, BN_SIZE * GROWTH_RATE, 3, 3, 3),
            )
        params["denseblock%d" % (bi + 1)] = block
        nfeat = nfeat + num_layers * GROWTH_RATE
        if bi != len(BLOCK_CONFIG) - 1:
            params["transition%d" % (bi + 1)] = dict(
                norm=bn_p(nfeat),
                conv=conv_w(nfeat // 2, nfeat, 1, 1, 1),
            )
            nfeat = nfeat // 2
    params["norm5"] = bn_p(nfeat)   # nfeat == 536

    params["gru1"] = dict(fwd=gru_dir(536 * 7 * 7, GRU_HIDDEN),
                          bwd=gru_dir(536 * 7 * 7, GRU_HIDDEN))
    params["gru2"] = dict(fwd=gru_dir(2 * GRU_HIDDEN, GRU_HIDDEN),
                          bwd=gru_dir(2 * GRU_HIDDEN, GRU_HIDDEN))
    lin_s = 1.0 / np.sqrt(512)
    params["fc_w"] = jax.random.uniform(nk(), (2, 512), jnp.float32, -lin_s, lin_s)
    params["fc_b"] = jax.random.uniform(nk(), (2,), jnp.float32, -lin_s, lin_s)
    return params


def _fold_bn(bn, eps=1e-5):
    scale = bn["gamma"] / jnp.sqrt(bn["var"] + eps)
    shift = bn["beta"] - bn["mean"] * scale
    return scale.astype(jnp.float32), shift.astype(jnp.float32)


def _pack_conv_weight(w):
    """(Cout, Cin, kt, kh, kw) -> (kt*kh*kw*Cin, Cout) matching im2col K order."""
    cout = w.shape[0]
    return jnp.transpose(w, (2, 3, 4, 1, 0)).reshape(-1, cout)


def _pack_matmul(wm, pro=None, epi=None, pro_relu=True, epi_relu=True):
    """Pad/cast a (K, N) weight to bf16 (Kp, Np); fold optional BN prologue
    (per-K-channel, bf16) and epilogue (per-N-channel, f32) scale/shift."""
    k, n = wm.shape
    kp, tk = _choose_k_tiling(k)
    np_, tn = _choose_n_tiling(n)
    w = jnp.zeros((kp, np_), jnp.bfloat16).at[:k, :n].set(wm.astype(jnp.bfloat16))
    packed = dict(w=w, n=n, tk=tk, tn=tn, pro_relu=pro_relu, epi_relu=epi_relu)
    if pro is not None:
        s, t = pro
        assert s.shape[0] == k
        packed["ps"] = jnp.pad(s, (0, kp - k)).astype(jnp.bfloat16).reshape(1, kp)
        packed["pt"] = jnp.pad(t, (0, kp - k)).astype(jnp.bfloat16).reshape(1, kp)
    if epi is not None:
        s, t = epi
        packed["es"] = jnp.pad(s.astype(jnp.float32), (0, np_ - n)).reshape(1, np_)
        packed["et"] = jnp.pad(t.astype(jnp.float32), (0, np_ - n)).reshape(1, np_)
    return packed


def prepare_params(params):
    """One-time packing: fold BN, transpose conv/GRU weights, cast to bf16."""
    pp = {}
    s0, t0 = _fold_bn(params["norm0"])
    pp["conv0"] = _pack_matmul(_pack_conv_weight(params["conv0"]),
                               epi=(s0, t0), epi_relu=True)

    for bi, num_layers in enumerate(BLOCK_CONFIG):
        blk = params["denseblock%d" % (bi + 1)]
        pblk = {}
        for li in range(num_layers):
            lp = blk["denselayer%d" % (li + 1)]
            s1, t1 = _fold_bn(lp["norm1"])
            s2, t2 = _fold_bn(lp["norm2"])
            pblk["denselayer%d" % (li + 1)] = dict(
                conv1=_pack_matmul(_pack_conv_weight(lp["conv1"]),
                                   pro=(s1, t1), epi=(s2, t2), epi_relu=True),
                conv2=_pack_matmul(_pack_conv_weight(lp["conv2"])),
            )
        pp["denseblock%d" % (bi + 1)] = pblk
        if bi != len(BLOCK_CONFIG) - 1:
            tp = params["transition%d" % (bi + 1)]
            st, tt = _fold_bn(tp["norm"])
            pp["transition%d" % (bi + 1)] = dict(
                conv=_pack_matmul(_pack_conv_weight(tp["conv"]), pro=(st, tt)))

    # norm5 (no ReLU) is fused into the gru1 input projection as a prologue
    # over the (C, H, W)-flattened features (each channel repeated H*W times).
    s5, t5 = _fold_bn(params["norm5"])
    s5f = jnp.repeat(s5, 7 * 7)
    t5f = jnp.repeat(t5, 7 * 7)

    def pack_gru(gp, pro=None):
        wih_cat = jnp.concatenate([gp["fwd"]["w_ih"], gp["bwd"]["w_ih"]],
                                  axis=0).T                    # (F, 6H)
        dirs = []
        for d in ("fwd", "bwd"):
            dirs.append(dict(
                w_hh_t=gp[d]["w_hh"].T.astype(jnp.bfloat16),
                b_ih=gp[d]["b_ih"].reshape(1, -1).astype(jnp.float32),
                b_hh=gp[d]["b_hh"].reshape(1, -1).astype(jnp.float32)))
        return dict(w_ih_cat=_pack_matmul(wih_cat, pro=pro, pro_relu=False),
                    dirs=dirs)

    pp["gru1"] = pack_gru(params["gru1"], pro=(s5f, t5f))
    pp["gru2"] = pack_gru(params["gru2"])

    pp["fc_wt"] = params["fc_w"].T.astype(jnp.float32)
    pp["fc_b"] = params["fc_b"].reshape(1, -1).astype(jnp.float32)
    return pp


if __name__ == "__main__":
    # Small batch/sequence; spatial 224x224 is implied by the module (the final
    # feature map must be 536 x 7 x 7 to feed gru1 = GRU(536*7*7, 256)).
    B, T, H, W = 1, 2, 224, 224
    params = build_params(seed=0)
    packed = prepare_params(params)
    x = jax.random.normal(jax.random.PRNGKey(0), (B, 3, T, H, W), jnp.float32)

    out = dense3d_forward(x, packed)
    out = jax.block_until_ready(out)

    assert out.shape == (B, T, 2), out.shape
    assert bool(jnp.all(jnp.isfinite(out)))
    print("KERNEL_OK")
</pallas_src>

<mosaic_0001>
module attributes {stable_mosaic.version = 11 : i64} {
  func.func @kernel(%arg0: i32, %arg1: i32, %arg2: i32, %arg3: memref<256x768xbf16, #tpu.memory_space<vmem>>, %arg4: memref<768x128xbf16, #tpu.memory_space<vmem>>, %arg5: memref<1x128xf32, #tpu.memory_space<vmem>>, %arg6: memref<1x128xf32, #tpu.memory_space<vmem>>, %arg7: memref<256x128xbf16, #tpu.memory_space<vmem>>, %arg8: memref<256x128xf32, #tpu.memory_space<vmem>>) attributes {dimension_semantics = [#tpu.dimension_semantics<parallel>, #tpu.dimension_semantics<parallel>, #tpu.dimension_semantics<arbitrary>], iteration_bounds = array<i64: 98, 1, 1>, scalar_prefetch = 0 : i64, scratch_operands = 1 : i64, tpu.core_type = #tpu.core_type<tc>, window_params = [{transform_indices = @transform_0, window_bounds = array<i64: 256, 768>}, {transform_indices = @transform_1, window_bounds = array<i64: 768, 128>}, {transform_indices = @transform_2, window_bounds = array<i64: 1, 128>}, {transform_indices = @transform_3, window_bounds = array<i64: 1, 128>}, {transform_indices = @transform_4, window_bounds = array<i64: 256, 128>}]} {
    %c0_i32 = arith.constant 0 : i32
    %0 = arith.cmpi eq, %arg2, %c0_i32 : i32
    %1 = arith.extui %0 : i1 to i32
    %c0_i32_0 = arith.constant 0 : i32
    %2 = arith.cmpi ne, %1, %c0_i32_0 : i32
    scf.if %2 {
      %cst_10 = arith.constant 0.000000e+00 : f32
      %12 = vector.broadcast %cst_10 : f32 to vector<256x128xf32>
      %c0_11 = arith.constant 0 : index
      %c0_12 = arith.constant 0 : index
      %13 = vector.load %arg8[%c0_11, %c0_12] : memref<256x128xf32, #tpu.memory_space<vmem>>, vector<256x128xf32>
      tpu.vector_store %arg8[%c0_11, %c0_12], %12 {strides = array<i32>} : memref<256x128xf32, #tpu.memory_space<vmem>>, vector<256x128xf32>,
    } else {
    }
    %c0 = arith.constant 0 : index
    %c0_1 = arith.constant 0 : index
    %3 = vector.load %arg3[%c0, %c0_1] : memref<256x768xbf16, #tpu.memory_space<vmem>>, vector<256x768xbf16>
    %c0_2 = arith.constant 0 : index
    %c0_3 = arith.constant 0 : index
    %4 = vector.load %arg8[%c0_2, %c0_3] : memref<256x128xf32, #tpu.memory_space<vmem>>, vector<256x128xf32>
    %c0_4 = arith.constant 0 : index
    %c0_5 = arith.constant 0 : index
    %5 = vector.load %arg4[%c0_4, %c0_5] : memref<768x128xbf16, #tpu.memory_space<vmem>>, vector<768x128xbf16>
    %cst = arith.constant dense<0.000000e+00> : vector<256x128xf32>
    %6 = tpu.matmul %3, %5, %cst {dimension_numbers = #tpu.dot_dimension_numbers<[1], [0], [0], [1], [0, 0, 1, 1], [], []>} : vector<256x768xbf16>, vector<768x128xbf16>, vector<256x128xf32> -> vector<256x128xf32>
    %7 = arith.addf %4, %6 : vector<256x128xf32>
    %c0_6 = arith.constant 0 : index
    %c0_7 = arith.constant 0 : index
    %8 = vector.load %arg8[%c0_6, %c0_7] : memref<256x128xf32, #tpu.memory_space<vmem>>, vector<256x128xf32>
    tpu.vector_store %arg8[%c0_6, %c0_7], %7 {strides = array<i32>} : memref<256x128xf32, #tpu.memory_space<vmem>>, vector<256x128xf32>,
    %c0_i32_8 = arith.constant 0 : i32
    %9 = arith.cmpi eq, %arg2, %c0_i32_8 : i32
    %10 = arith.extui %9 : i1 to i32
    %c0_i32_9 = arith.constant 0 : i32
    %11 = arith.cmpi ne, %10, %c0_i32_9 : i32
    scf.if %11 {
      %c0_10 = arith.constant 0 : index
      %c0_11 = arith.constant 0 : index
      %12 = vector.load %arg8[%c0_10, %c0_11] : memref<256x128xf32, #tpu.memory_space<vmem>>, vector<256x128xf32>
      %c0_12 = arith.constant 0 : index
      %c0_13 = arith.constant 0 : index
      %13 = vector.load %arg5[%c0_12, %c0_13] : memref<1x128xf32, #tpu.memory_space<vmem>>, vector<1x128xf32>
      %14 = vector.broadcast %13 : vector<1x128xf32> to vector<256x128xf32>
      %15 = arith.mulf %12, %14 : vector<256x128xf32>
      %c0_14 = arith.constant 0 : index
      %c0_15 = arith.constant 0 : index
      %16 = vector.load %arg6[%c0_14, %c0_15] : memref<1x128xf32, #tpu.memory_space<vmem>>, vector<1x128xf32>
      %17 = vector.broadcast %16 : vector<1x128xf32> to vector<256x128xf32>
      %18 = arith.addf %15, %17 : vector<256x128xf32>
      %cst_16 = arith.constant 0.000000e+00 : f32
      %19 = vector.broadcast %cst_16 : f32 to vector<256x128xf32>
      %20 = arith.maximumf %18, %19 : vector<256x128xf32>
      %21 = arith.truncf %20 : vector<256x128xf32> to vector<256x128xbf16>
      %c0_17 = arith.constant 0 : index
      %c0_18 = arith.constant 0 : index
      %22 = vector.load %arg7[%c0_17, %c0_18] : memref<256x128xbf16, #tpu.memory_space<vmem>>, vector<256x128xbf16>
      tpu.vector_store %arg7[%c0_17, %c0_18], %21 {strides = array<i32>} : memref<256x128xbf16, #tpu.memory_space<vmem>>, vector<256x128xbf16>,
    } else {
    }
    return
  }
  func.func @transform_0(%arg0: i32, %arg1: i32, %arg2: i32) -> (i32, i32) {
    %c0_i32 = arith.constant 0 : i32
    return %arg0, %arg2 : i32, i32
  }
  func.func @transform_1(%arg0: i32, %arg1: i32, %arg2: i32) -> (i32, i32) {
    %c0_i32 = arith.constant 0 : i32
    return %arg2, %arg1 : i32, i32
  }
  func.func @transform_2(%arg0: i32, %arg1: i32, %arg2: i32) -> (i32, i32) {
    %c0_i32 = arith.constant 0 : i32
    %c0_i32_0 = arith.constant 0 : i32
    return %c0_i32, %arg1 : i32, i32
  }
  func.func @transform_3(%arg0: i32, %arg1: i32, %arg2: i32) -> (i32, i32) {
    %c0_i32 = arith.constant 0 : i32
    %c0_i32_0 = arith.constant 0 : i32
    return %c0_i32, %arg1 : i32, i32
  }
  func.func @transform_4(%arg0: i32, %arg1: i32, %arg2: i32) -> (i32, i32) {
    %c0_i32 = arith.constant 0 : i32
    return %arg0, %arg1 : i32, i32
  }
}

</mosaic_0001>

<bundles_post_ra>
// kernel: _fused_matmul_padded.1
= control target key start
LH: loop header
LB: loop body
LE: loop exit
PB: predicated region body
PF: predicated region fallthrough
CT: control target
= control target key end

     0   :  { %9 = vsyncpa [#allocation4], 0  ;;  %s4106_s0 = inlined_call_operand.hbm [shape: bf16[25088,768], index: 0, kind: input, shape index: {}]   ;;  %s4107_s1 = inlined_call_operand.hbm [shape: bf16[768,128], index: 1, kind: input, shape index: {}]   ;;  %s4108_s2 = inlined_call_operand.hbm [shape: f32[1,128], index: 2, kind: input, shape index: {}]   ;;  %s4109_s3 = inlined_call_operand.hbm [shape: f32[1,128], index: 3, kind: input, shape index: {}]   ;;  %s4110_s4 = inlined_call_operand.hbm [shape: bf16[25088,128], index: 4, kind: output, shape index: {}]  }
   0x1   :  { %11 = vsyncpa [#allocation4 + $0x1], 0 }
   0x2   :  { %12 = vsyncpa [#allocation7], 0 }
   0x3   :  { %13 = vsyncpa [#allocation10], 0 }
   0x4   :  { %14 = vsyncpa [#allocation5], 0 }
   0x5   :  { %16 = vsyncpa [#allocation5 + $0x1], 0  ;;  %s3547_s15 = smov 0   ;;  %s3549_s16 = smov 0  }
   0x6   :  { %s3551_s17 = smov 0   ;;  %s3553_s18 = smov 0  }
   0x7   :  { %s3555_s19 = smov 0   ;;  %s3557_s20 = smov 0  }
   0x8 LB: > { %s2333_s21 = sadd.s32 4294967295, %s3509_s20   ;;  %s2334_s22 = sadd.s32 4294967294, %s3509_s20   ;;  %s3509_s20 = sphi %s3557_s20, %s22_s20   ;;  %s3505_s19 = sphi %s3555_s19, %s4136_s19   ;;  %s3501_s18 = sphi %s3553_s18, %s4135_s18   ;;  %s3497_s17 = sphi %s3551_s17, %s4134_s17   ;;  %s3493_s16 = sphi %s3549_s16, %s4133_s16   ;;  %s3489_s15 = sphi %s3547_s15, %s4132_s15  }
   0x9   : > { %p63_p0 = scmp.ne.s32.totalorder %s3493_s16, %s3489_s15  ;;  %p3581_p1 = scmp.eq.s32.totalorder %s2333_s21, 0 }
   0xa   : > { %p3585_p2 = scmp.eq.s32.totalorder %s2333_s21, 97  ;;  %p175_p3 = scmp.eq.s32.totalorder %s2334_s22, 97 }
   0xb   : > { %s4116_s23 = scalar_select %p3581_p1, 1, 0 }
   0xc   : > { %s4117_s24 = scalar_select %p3585_p2, 1, 0 }
   0xd   : > { %p3591_p4 = por %p3581_p1, %p63_p0  ;;  %p2335_p5 = scmp.ge.s32.totalorder %s3509_s20, 1 }
   0xe   : > { %p3596_p6 = por %p175_p3, %p63_p0  ;;  %p182_p7 = scmp.lt.s32.totalorder %s3509_s20, 99 }
   0xf   : > { %s4118_s25 = scalar_select %p3591_p4, 1, 0 }
  0x10   : > { %s4119_s26 = scalar_select %p3596_p6, 1, 0 }
  0x11   : > { %p3601_p8 = pnand %p2335_p5, %p182_p7  ;;  %s3511_s28 = smov [#allocation6]  }
  0x12   : > { %4120 = sst [smem:[#allocation16_spill]] %s4119_s26  ;;  %s198_s29 = sshll.u32 %s3511_s28, 4  ;;  %s3605_s29 = int_to_ptr.vmem [resolvable:$true] %s198_s29 }
  0x13   : > { %s4121_s27 = scalar_select %p3601_p8, 1, 0 }
  0x14   : > { %p3030_p9 = pneg %p3601_p8  ;;  %s3512_s5 = smov [#allocation8]  }
  0x15   : > { %s214_s6 = sshll.u32 %s3512_s5, 4  ;;  %s3513_s7 = smov [#allocation9]   ;;  %s3615_s6 = int_to_ptr.vmem [resolvable:$true] %s214_s6 }
  0x16   : > { %p3611_p10 = pnand %p3030_p9, %p3581_p1  ;;  %s3617_s8 = sshll.u32 %s3513_s7, 4  ;;  %s228_s8 = int_to_ptr.vmem [resolvable:$true] %s3617_s8 }
  0x17   : > { %s3305_s11 = scalar_lea.hbm %s4107_s1, 6144 }
  0x18   : > { %p3306_p11 = scmp.ne.s32.totalorder %s4107_s1, %s3305_s11  ;;  %p3627_p12 = pneg %p3611_p10 }
  0x19   : > { %p3312_p3 = scmp.lt.u32.totalorder %s3305_s11, %s4107_s1 }
  0x1a   : > { %p3308_p13 = pnand %p3627_p12, %p3306_p11 }
  0x1c   : > { %p3309_p0 = pneg %p3308_p13 }
  0x1e   : > { %p3314_p5 = pnand %p3312_p3, %p3309_p0 }
  0x20   : > { %3317 = shalt.err (!%p3314_p5)
}
  0x21   : > { %s3318_s28 = scalar_lea.vmem %s3605_s29, 6144  ;;  %p3326_p1 = scmp.lt.s32.totalorder %s3605_s29, %s3605_s29 }
  0x22   : > { %p3319_p7 = scmp.ne.s32.totalorder %s3605_s29, %s3318_s28  ;;  %p3327_p4 = scmp.lt.s32.totalorder %s3318_s28, %s3318_s28 }
  0x24   : > { %p3321_p9 = pnand %p3319_p7, %p3627_p12  ;;  %p3328_p11 = por %p3327_p4, %p3326_p1 }
  0x26   : > { %p3322_p6 = pneg %p3321_p9 }
  0x28   : > { %p3329_p13 = pnand %p3328_p11, %p3322_p6 }
  0x2a   : > { %3332 = shalt.err (!%p3329_p13)
}
  0x2b   : > { %s3514_s5 = smov 64   ;;  %s3515_s7 = smov 4  }
  0x2c   : > { %3033 = dma.hbm_to_vmem [thread:$0]  (!%p3611_p10), %s4107_s1, 6144, %s3605_s29, [#allocation7], %s3514_s5, %s3514_s5, %s3515_s7  }
  0x2d   : > { %s3333_s13 = scalar_lea.hbm %s4108_s2, 16 }
  0x2e   : > { %p3334_p1 = scmp.ne.s32.totalorder %s4108_s2, %s3333_s13  ;;  %p3340_p0 = scmp.lt.u32.totalorder %s3333_s13, %s4108_s2 }
  0x30   : > { %p3336_p4 = pnand %p3334_p1, %p3627_p12 }
  0x32   : > { %p3337_p6 = pneg %p3336_p4 }
  0x34   : > { %p3342_p3 = pnand %p3340_p0, %p3337_p6 }
  0x36   : > { %3345 = shalt.err (!%p3342_p3)
}
  0x37   : > { %s3346_s29 = scalar_lea.vmem %s3615_s6, 16  ;;  %s3353_s5 = scalar_lea.vmem %s3615_s6, 32 }
  0x38   : > { %p3347_p5 = scmp.ne.s32.totalorder %s3615_s6, %s3346_s29  ;;  %p3354_p11 = scmp.lt.s32.totalorder %s3615_s6, %s3615_s6 }
  0x39   : > { %p3355_p13 = scmp.lt.s32.totalorder %s3353_s5, %s3346_s29 }
  0x3a   : > { %p3349_p7 = pnand %p3347_p5, %p3627_p12 }
  0x3b   : > { %p3356_p1 = por %p3355_p13, %p3354_p11 }
  0x3c   : > { %p3350_p9 = pneg %p3349_p7 }
  0x3e   : > { %p3357_p4 = pnand %p3356_p1, %p3350_p9 }
  0x40   : > { %3360 = shalt.err (!%p3357_p4)
}
  0x41   : > { %3036 = dma.hbm_to_vmem [thread:$0]  (!%p3611_p10), %s4108_s2, 16, %s3615_s6, [#allocation7]  }
  0x42   : > { %s3361_s11 = scalar_lea.hbm %s4109_s3, 16 }
  0x43   : > { %p3362_p6 = scmp.ne.s32.totalorder %s4109_s3, %s3361_s11  ;;  %p3368_p5 = scmp.lt.u32.totalorder %s3361_s11, %s4109_s3 }
  0x45   : > { %p3364_p0 = pnand %p3362_p6, %p3627_p12 }
  0x47   : > { %p3365_p3 = pneg %p3364_p0 }
  0x49   : > { %p3370_p7 = pnand %p3368_p5, %p3365_p3 }
  0x4b   : > { %3373 = shalt.err (!%p3370_p7)
}
  0x4c   : > { %s3374_s28 = scalar_lea.vmem %s228_s8, 16  ;;  %s3381_s6 = scalar_lea.vmem %s228_s8, 32 }
  0x4d   : > { %p3375_p9 = scmp.ne.s32.totalorder %s228_s8, %s3374_s28  ;;  %p3382_p1 = scmp.lt.s32.totalorder %s228_s8, %s228_s8 }
  0x4e   : > { %p3383_p4 = scmp.lt.s32.totalorder %s3381_s6, %s3374_s28 }
  0x4f   : > { %p3377_p11 = pnand %p3375_p9, %p3627_p12 }
  0x50   : > { %p3384_p8 = por %p3383_p4, %p3382_p1 }
  0x51   : > { %p3378_p13 = pneg %p3377_p11 }
  0x53   : > { %p3385_p2 = pnand %p3384_p8, %p3378_p13 }
  0x55   : > { %3388 = shalt.err (!%p3385_p2)
}
  0x56   : > { %3039 = dma.hbm_to_vmem [thread:$0]  (!%p3611_p10), %s4109_s3, 16, %s228_s8, [#allocation10]  }
  0x57   : > { %s50_s14 = sadd.s32 1, %s3497_s17  ;;  %s41_s26 = sadd.s32 1, %s3505_s19 }
  0x58   : > { %p57_p2 = scmp.ne.s32.totalorder %s3497_s17, %s3493_s16  ;;  %p43_p8 = scmp.ge.s32.totalorder %s41_s26, 98 }
  0x59   : > { %p58_p12 = scmp.eq.s32.totalorder %s3509_s20, 0  ;;  %p4124_p6 = scmp.ne.s32.totalorder %s4117_s24, 0 }
  0x5a   : > { %p3051_p3 = scmp.lt.s32.totalorder %s3509_s20, 98  ;;  %s4138_s26 = smov (%p43_p8, %s41_s26), 0 }
  0x5b   : > { %p3698_p0 = por %p4124_p6, %p57_p2  ;;  %p59_p5 = por %p58_p12, %p57_p2 }
  0x5c   : > { %s238_s7 = sand.u32 1, %s3497_s17   ;;  %s45_s9 = ssub.s32 %s3505_s19, %s4138_s26 }
  0x5d   : > { %p48_p7 = scmp.eq.s32.totalorder %s45_s9, 0  ;;  %s3011_s8 = smul.u32 768, %s238_s7 }
  0x5e   : > { %s3012_s10 = smul.u32 12288, %s3505_s19  ;;  %p3709_p10 = pnand %p3051_p3, %p59_p5 }
  0x5f   : > { %s3714_s24 = scalar_select %p48_p7, %s3497_s17, %s50_s14  }
  0x60   : > { %s3719_s21 = scalar_lea.hbm %s4106_s0, %s3012_s10  ;;  %s242_s22 = scalar_lea.vmem [#allocation3], %s3011_s8 }
  0x61   : > { %s252_s28 = sshll.u32 %s242_s22, 4  ;;  %s3723_s6 = scalar_lea.sflag [#allocation4], %s238_s7  ;;  %s3721_s28 = int_to_ptr.vmem [resolvable:$true] %s252_s28 }
  0x62   : > { %s3389_s29 = scalar_lea.hbm %s3719_s21, 12288  ;;  %p3391_p11 = pneg %p3709_p10 }
  0x63   : > { %p3390_p9 = scmp.ne.s32.totalorder %s3719_s21, %s3389_s29  ;;  %s3394_s9 = scalar_lea.hbm %s4106_s0, 1204224 }
  0x64   : > { %p3395_p4 = scmp.lt.u32.totalorder %s3719_s21, %s4106_s0  ;;  %p3396_p2 = scmp.lt.u32.totalorder %s3394_s9, %s3389_s29 }
  0x65   : > { %p3392_p13 = pnand %p3391_p11, %p3390_p9  ;;  %p3398_p12 = scmp.lt.u32.totalorder %s3389_s29, %s3719_s21 }
  0x66   : > { %p3397_p8 = por %p3396_p2, %p3395_p4 }
  0x67   : > { %p3393_p1 = pneg %p3392_p13 }
  0x68   : > { %p3399_p6 = por %p3398_p12, %p3397_p8 }
  0x6a   : > { %p3400_p3 = pnand %p3399_p6, %p3393_p1 }
  0x6c   : > { %3403 = shalt.err (!%p3400_p3)
}
  0x6d   : > { %s3404_s7 = scalar_lea.vmem %s3721_s28, 12288  ;;  %s3516_s8 = smov [#allocation3]  }
  0x6e   : > { %p3405_p5 = scmp.ne.s32.totalorder %s3721_s28, %s3404_s7  ;;  %s3409_s13 = sshll.u32 %s3516_s8, 4  ;;  %s3410_s13 = int_to_ptr.vmem [resolvable:$false] %s3409_s13 }
  0x6f   : > { %s3411_s22 = scalar_lea.vmem %s3410_s13, 24576  ;;  %p3412_p13 = scmp.lt.s32.totalorder %s3721_s28, %s3410_s13 }
  0x70   : > { %p3407_p7 = pnand %p3405_p5, %p3391_p11  ;;  %p3413_p4 = scmp.lt.s32.totalorder %s3411_s22, %s3404_s7 }
  0x72   : > { %p3408_p9 = pneg %p3407_p7  ;;  %p3414_p2 = por %p3413_p4, %p3412_p13 }
  0x74   : > { %p3415_p8 = pnand %p3414_p2, %p3408_p9 }
  0x76   : > { %3418 = shalt.err (!%p3415_p8)
}
  0x77   : > { %s3517_s29 = smov 384   ;;  %s3518_s5 = smov 24  }
  0x78   : > { %3043 = dma.hbm_to_vmem [thread:$0]  (!%p3709_p10), %s3719_s21, 12288, %s3721_s28, %s3723_s6, %s3517_s29, %s3517_s29, %s3518_s5  }
  0x79   : > { %p4127_p11 = scmp.ne.s32.totalorder %s4121_s27, 0 }
  0x7a   : > { %s3754_s14 = sand.u32 (!%p4127_p11), 1, %s3493_s16   ;;  %p4128_p1 = scmp.ne.s32.totalorder (!%p4127_p11), %s4118_s25, 0 }
  0x7b   : > { %264 = sbr.rel (%p4127_p11) target bundleno = 597 (0x255), region = 36  ;;  %s267_s10 = scalar_lea.sflag (!%p4127_p11), [#allocation4], %s3754_s14 }
  0x7c   : > { %s3013_s9 = smul.u32 (!%p4127_p11), 768, %s3754_s14 }
  0x7e   : > { %s3758_s12 = scalar_lea.vmem (!%p4127_p11), [#allocation3], %s3013_s9 }
  0x82   : > { %3472 = dma.done.wait (%p4128_p1), %s267_s10, 12288  }
  0x83   : > { %3474 = vsyncadd (%p4128_p1), %s267_s10, 4294955008  ;;  %p4129_p10 = scmp.ne.s32.totalorder %s4116_s23, 0 }
  0x85   : > { %3476 = dma.done.wait (%p4129_p10), [#allocation7], 6160  }
  0x86   : > { %3478 = vsyncadd (%p4129_p10), [#allocation7], 4294961136 }
  0x87   : > { %3480 = dma.done.wait (%p4129_p10), [#allocation10], 16  }
  0x88   : > { %3482 = vsyncadd (%p4129_p10), [#allocation10], 4294967280  ;;  %v3113_v0 = vld [vmem:[#allocation6 + $0x40] sm:$0xff]   ;;  %v3115_v2 = vld [vmem:[#allocation6 + $0x48] sm:$0xff]   ;;  %s2347_s23 = sshll.u32 %s3754_s14, 7  ;;  %s2563_s27 = sshll.u32 %s3501_s18, 11 }
  0x89   : > { %v3114_v1 = vld [vmem:[#allocation6] sm:$0xff]   ;;  %2659 = vmatprep.subr.bf16.mxu0 %v3113_v0  ;;  %2995 = vmatprep.subr.bf16.mxu1 %v3113_v0  ;;  %v3116_v3 = vld [vmem:[#allocation6 + $0x8] sm:$0xff]   ;;  %v3117_v4 = vld [vmem:[#allocation6 + $0x50] sm:$0xff]   ;;  %s3946_s25 = scalar_lea.vmem [#allocation11], %s2347_s23  ;;  %s4055_s6 = scalar_lea.hbm %s4110_s4, %s2563_s27 }
  0x8a   : > { %2660 = vmatpush3.bf16.msra.mxu0 %v3114_v1  ;;  %3003 = vmatpush3.bf16.msra.mxu1 %v3114_v1  ;;  %v3118_v5 = vld [vmem:[#allocation6 + $0x10] sm:$0xff]   ;;  %v3119_v6 = vld [vmem:[#allocation6 + $0x58] sm:$0xff]   ;;  %v3121_v8 = vld [vmem:[#allocation6 + $0x60] sm:$0xff]   ;;  %s2207_s11 = sshll.u32 %s3946_s25, 4  ;;  %s2193_s7 = scalar_lea.sflag [#allocation5], %s3754_s14  ;;  %s4057_s11 = int_to_ptr.vmem [resolvable:$true] %s2207_s11 }
  0x8b   : > { %2661 = vmatprep.subr.bf16.mxu0 %v3115_v2  ;;  %2996 = vmatprep.subr.bf16.mxu1 %v3115_v2  ;;  %v3120_v7 = vld [vmem:[#allocation6 + $0x18] sm:$0xff]   ;;  %v3122_v9 = vld [vmem:[#allocation6 + $0x20] sm:$0xff]   ;;  %v3123_v10 = vld [vmem:[#allocation6 + $0x68] sm:$0xff]   ;;  %s3419_s8 = scalar_lea.vmem %s4057_s11, 2048  ;;  %s3519_s18 = smov [#allocation11]  }
  0x8c   : > { %v3131_v11 = vld [vmem:[%s3758_s12 + $0x4] ss:$24 sps:$4 sm:$0xff]   ;;  %v3124_v13 = vld [vmem:[#allocation6 + $0x28] sm:$0xff]   ;;  %v3125_v14 = vld [vmem:[#allocation6 + $0x70] sm:$0xff]   ;;  %p3420_p12 = scmp.ne.s32.totalorder %s4057_s11, %s3419_s8  ;;  %s3423_s13 = sshll.u32 %s3519_s18, 4  ;;  %s3424_s13 = int_to_ptr.vmem [resolvable:$false] %s3423_s13 }
  0x8d   : > { %v3134_v12 = vld [vmem:[%s3758_s12 + $0x184] ss:$24 sps:$4 sm:$0xff]   ;;  %1372 = vmatprep.mubr.bf16.mxu0 %v3131_v11  ;;  %v3126_v15 = vld [vmem:[#allocation6 + $0x30] sm:$0xff]   ;;  %v3129_v19 = vld [vmem:[%s3758_s12] ss:$24 sps:$4 sm:$0xff]   ;;  %s3425_s22 = scalar_lea.vmem %s3424_s13, 4096  ;;  %p3426_p5 = scmp.lt.s32.totalorder %s4057_s11, %s3424_s13 }
  0x8e   : > { %2662 = vmatpush3.bf16.msra.mxu0 %v3116_v3  ;;  %3004 = vmatpush3.bf16.msra.mxu1 %v3116_v3  ;;  %v3127_v16 = vld [vmem:[#allocation6 + $0x78] sm:$0xff]   ;;  %v3135_v18 = vld [vmem:[#allocation6 + $0xc0] sm:$0xff]   ;;  %v3139_v24 = vld [vmem:[%s3758_s12 + $0x34] ss:$24 sps:$4 sm:$0xff]   ;;  %p3421_p6 = pnand %p3420_p12, %p3698_p0  ;;  %p3427_p7 = scmp.lt.s32.totalorder %s3425_s22, %s3419_s8 }
  0x8f   : > { %2663 = vmatprep.subr.bf16.mxu0 %v3117_v4  ;;  %2997 = vmatprep.subr.bf16.mxu1 %v3117_v4  ;;  %v3128_v17 = vld [vmem:[#allocation6 + $0x38] sm:$0xff]   ;;  %v3137_v20 = vld [vmem:[#allocation6 + $0x140] sm:$0xff]   ;;  %v3141_v25 = vld [vmem:[%s3758_s12 + $0x1b4] ss:$24 sps:$4 sm:$0xff]  }
  0x90   : > { %1436 = vmatprep.mubr.bf16.mxu1 %v3134_v12  ;;  %v3132_v21 = vld [vmem:[%s3758_s12 + $0x180] ss:$24 sps:$4 sm:$0xff]   ;;  %v3145_v26 = vld [vmem:[#allocation6 + $0xc8] sm:$0xff]   ;;  %v3155_v30 = vld [vmem:[#allocation6 + $0xd0] sm:$0xff]   ;;  %p3422_p3 = pneg %p3421_p6  ;;  %p3428_p9 = por %p3427_p7, %p3426_p5 }
  0x91   : > { %v3136_v22 = vld [vmem:[#allocation6 + $0x80] sm:$0xff]   ;;  %v3146_v27 = vld [vmem:[#allocation6 + $0x88] sm:$0xff]   ;;  %v3157_v33 = vld [vmem:[#allocation6 + $0x150] sm:$0xff]  }
  0x92   : > { %2664 = vmatpush3.bf16.msra.mxu0 %v3118_v5  ;;  %3005 = vmatpush3.bf16.msra.mxu1 %v3118_v5  ;;  %v3138_v23 = vld [vmem:[#allocation6 + $0x100] sm:$0xff]   ;;  %v3147_v28 = vld [vmem:[#allocation6 + $0x148] sm:$0xff]   ;;  %v3156_v36 = vld [vmem:[#allocation6 + $0x90] sm:$0xff]   ;;  %p3429_p13 = pnand %p3428_p9, %p3422_p3 }
  0x93   : > { %2665 = vmatprep.subr.bf16.mxu0 %v3119_v6  ;;  %2998 = vmatprep.subr.bf16.mxu1 %v3119_v6  ;;  %v3148_v29 = vld [vmem:[#allocation6 + $0x108] sm:$0xff]   ;;  %v3149_v34 = vld [vmem:[%s3758_s12 + $0x64] ss:$24 sps:$4 sm:$0xff]   ;;  %v3158_v37 = vld [vmem:[#allocation6 + $0x110] sm:$0xff]  }
  0x94   : > { %v3143_v31 = vld [vmem:[%s3758_s12 + $0x30] ss:$24 sps:$4 sm:$0xff]   ;;  %v3151_v35 = vld [vmem:[%s3758_s12 + $0x1e4] ss:$24 sps:$4 sm:$0xff]   ;;  %v3153_v40 = vld [vmem:[%s3758_s12 + $0x60] ss:$24 sps:$4 sm:$0xff]  }
  0x95   : > { %v3144_v32 = vld [vmem:[%s3758_s12 + $0x1b0] ss:$24 sps:$4 sm:$0xff]   ;;  %v3165_v38 = vld [vmem:[#allocation6 + $0xd8] sm:$0xff]   ;;  %v3159_v44 = vld [vmem:[%s3758_s12 + $0x94] ss:$24 sps:$4 sm:$0xff]  }
  0x96   : > { %2666 = vmatpush3.bf16.msra.mxu0 %v3120_v7  ;;  %3006 = vmatpush3.bf16.msra.mxu1 %v3120_v7  ;;  %v3167_v39 = vld [vmem:[#allocation6 + $0x158] sm:$0xff]   ;;  %v3161_v45 = vld [vmem:[%s3758_s12 + $0x214] ss:$24 sps:$4 sm:$0xff]   ;;  %v3175_v46 = vld [vmem:[#allocation6 + $0xe0] sm:$0xff]  }
  0x97   : > { %2667 = vmatprep.subr.bf16.mxu0 %v3121_v8  ;;  %2999 = vmatprep.subr.bf16.mxu1 %v3121_v8  ;;  %v3154_v41 = vld [vmem:[%s3758_s12 + $0x1e0] ss:$24 sps:$4 sm:$0xff]   ;;  %v3163_v50 = vld [vmem:[%s3758_s12 + $0x90] ss:$24 sps:$4 sm:$0xff]   ;;  %v3169_v53 = vld [vmem:[%s3758_s12 + $0xc4] ss:$24 sps:$4 sm:$0xff]  }
  0x98   : > { %v3166_v42 = vld [vmem:[#allocation6 + $0x98] sm:$0xff]   ;;  %v3176_v47 = vld [vmem:[#allocation6 + $0xa0] sm:$0xff]   ;;  %v3164_v51 = vld [vmem:[%s3758_s12 + $0x210] ss:$24 sps:$4 sm:$0xff]  }
  0x99   : > { %v3168_v43 = vld [vmem:[#allocation6 + $0x118] sm:$0xff]   ;;  %v3177_v48 = vld [vmem:[#allocation6 + $0x160] sm:$0xff]   ;;  %v3185_v52 = vld [vmem:[#allocation6 + $0xe8] sm:$0xff]  }
  0x9a   : > { %2668 = vmatpush3.bf16.msra.mxu0 %v3122_v9  ;;  %3007 = vmatpush3.bf16.msra.mxu1 %v3122_v9  ;;  %v3178_v49 = vld [vmem:[#allocation6 + $0x120] sm:$0xff]   ;;  %v3186_v55 = vld [vmem:[#allocation6 + $0xa8] sm:$0xff]   ;;  %v3195_v58 = vld [vmem:[#allocation6 + $0xf0] sm:$0xff]  }
  0x9b   : > { %2669 = vmatprep.subr.bf16.mxu0 %v3123_v10  ;;  %3000 = vmatprep.subr.bf16.mxu1 %v3123_v10  ;;  %v3171_v54 = vld [vmem:[%s3758_s12 + $0x244] ss:$24 sps:$4 sm:$0xff]   ;;  %v3187_v56 = vld [vmem:[#allocation6 + $0x168] sm:$0xff]   ;;  %v3173_v59 = vld [vmem:[%s3758_s12 + $0xc0] ss:$24 sps:$4 sm:$0xff]  }
  0x9c   : > { %v3188_v57 = vld [vmem:[#allocation6 + $0x128] sm:$0xff]   ;;  %v3174_v60 = vld [vmem:[%s3758_s12 + $0x240] ss:$24 sps:$4 sm:$0xff]   ;;  %v3196_v61 = vld [vmem:[#allocation6 + $0xb0] sm:$0xff]  }
  0x9d   : > { %v3179_v62 = vld [vmem:[%s3758_s12 + $0xf4] ss:$24 sps:$4 sm:$0xff]   ;;  %v3205_v2 = vld [vmem:[#allocation6 + $0xf8] sm:$0xff]   ;;  %v3183_v6 = vld [vmem:[%s3758_s12 + $0xf0] ss:$24 sps:$4 sm:$0xff]  }
  0x9e   : > { %2670 = vmatpush3.bf16.msra.mxu0 %v3124_v13  ;;  %3008 = vmatpush3.bf16.msra.mxu1 %v3124_v13  ;;  %v3197_v63 = vld [vmem:[#allocation6 + $0x170] sm:$0xff]   ;;  %v3206_v3 = vld [vmem:[#allocation6 + $0xb8] sm:$0xff]  }
  0x9f   : > { %2671 = vmatprep.subr.bf16.mxu0 %v3125_v14  ;;  %3001 = vmatprep.subr.bf16.mxu1 %v3125_v14  ;;  %v3198_v0 = vld [vmem:[#allocation6 + $0x130] sm:$0xff]   ;;  %v3207_v4 = vld [vmem:[#allocation6 + $0x178] sm:$0xff]  }
  0xa0   : > { %v3181_v1 = vld [vmem:[%s3758_s12 + $0x274] ss:$24 sps:$4 sm:$0xff]   ;;  %v3208_v5 = vld [vmem:[#allocation6 + $0x138] sm:$0xff]   ;;  %v3184_v7 = vld [vmem:[%s3758_s12 + $0x270] ss:$24 sps:$4 sm:$0xff]  }
  0xa1   : > { %v3189_v8 = vld [vmem:[%s3758_s12 + $0x124] ss:$24 sps:$4 sm:$0xff]   ;;  %v3193_v10 = vld [vmem:[%s3758_s12 + $0x120] ss:$24 sps:$4 sm:$0xff]   ;;  %v3199_v12 = vld [vmem:[%s3758_s12 + $0x154] ss:$24 sps:$4 sm:$0xff]  }
  0xa2   : > { %2672 = vmatpush3.bf16.msra.mxu0 %v3126_v15  ;;  %3009 = vmatpush3.bf16.msra.mxu1 %v3126_v15  ;;  %v3191_v9 = vld [vmem:[%s3758_s12 + $0x2a4] ss:$24 sps:$4 sm:$0xff]   ;;  %v3194_v11 = vld [vmem:[%s3758_s12 + $0x2a0] ss:$24 sps:$4 sm:$0xff]   ;;  %v3201_v13 = vld [vmem:[%s3758_s12 + $0x2d4] ss:$24 sps:$4 sm:$0xff]  }
  0xa3   : > { %2673 = vmatprep.subr.bf16.mxu0 %v3127_v16  ;;  %3002 = vmatprep.subr.bf16.mxu1 %v3127_v16  ;;  %v3203_v14 = vld [vmem:[%s3758_s12 + $0x150] ss:$24 sps:$4 sm:$0xff]   ;;  %v3211_v16 = vld [vmem:[%s3758_s12 + $0xc] ss:$24 sps:$4 sm:$0xff]  }
  0xa4   : > { %v3204_v15 = vld [vmem:[%s3758_s12 + $0x2d0] ss:$24 sps:$4 sm:$0xff]  }
  0xa6   : > { %2674 = vmatpush3.bf16.msra.mxu0 %v3128_v17  ;;  %3010 = vmatpush3.bf16.msra.mxu1 %v3128_v17  ;;  %v3214_v17 = vld [vmem:[%s3758_s12 + $0x14] ss:$24 sps:$4 sm:$0xff]  }
  0xa7   : > { %2771 = vmatprep.subr.bf16.mxu1 %v3135_v18  ;;  %2883 = vmatprep.subr.bf16.mxu0 %v3137_v20  ;;  %v3209_v18 = vld [vmem:[%s3758_s12 + $0x8] ss:$24 sps:$4 sm:$0xff]   ;;  %v3215_v20 = vld [vmem:[%s3758_s12 + $0x3c] ss:$24 sps:$4 sm:$0xff]  }
  0xa9   : > { %1373 = vmatmul.mubr.bf16.vlgmr.msra.gmra.mrb[0].mxu0 %v3129_v19  ;;  %1437 = vmatmul.mubr.bf16.vlgmr.msra.gmra.mrb[0].mxu1 %v3132_v21  ;;  %v3212_v19 = vld [vmem:[%s3758_s12 + $0x10] ss:$24 sps:$4 sm:$0xff]   ;;  %v3217_v21 = vld [vmem:[%s3758_s12 + $0x44] ss:$24 sps:$4 sm:$0xff]  }
  0xaa   : > { %2772 = vmatpush3.bf16.msra.mxu1 %v3136_v22  ;;  %2884 = vmatpush3.bf16.msra.mxu0 %v3138_v23  ;;  %v3219_v22 = vld [vmem:[%s3758_s12 + $0x38] ss:$24 sps:$4 sm:$0xff]  }
  0xab   : > { %1380 = vmatprep.mubr.bf16.mxu0 %v3139_v24  ;;  %1444 = vmatprep.mubr.bf16.mxu1 %v3141_v25  ;;  %v3220_v23 = vld [vmem:[%s3758_s12 + $0x40] ss:$24 sps:$4 sm:$0xff]   ;;  %v3221_v24 = vld [vmem:[%s3758_s12 + $0x6c] ss:$24 sps:$4 sm:$0xff]  }
  0xac   : > { %2773 = vmatprep.subr.bf16.mxu1 %v3145_v26  ;;  %2885 = vmatprep.subr.bf16.mxu0 %v3147_v28  ;;  %v3223_v25 = vld [vmem:[%s3758_s12 + $0x74] ss:$24 sps:$4 sm:$0xff]   ;;  %v3225_v26 = vld [vmem:[%s3758_s12 + $0x68] ss:$24 sps:$4 sm:$0xff]  }
  0xad   : > { %v3227_v28 = vld [vmem:[%s3758_s12 + $0x9c] ss:$24 sps:$4 sm:$0xff]  }
  0xae   : > { %2774 = vmatpush3.bf16.msra.mxu1 %v3146_v27  ;;  %2886 = vmatpush3.bf16.msra.mxu0 %v3148_v29  ;;  %v3226_v27 = vld [vmem:[%s3758_s12 + $0x70] ss:$24 sps:$4 sm:$0xff]   ;;  %v3229_v29 = vld [vmem:[%s3758_s12 + $0xa4] ss:$24 sps:$4 sm:$0xff]  }
  0xaf   : > { %2775 = vmatprep.subr.bf16.mxu1 %v3155_v30  ;;  %2887 = vmatprep.subr.bf16.mxu0 %v3157_v33  ;;  %v3231_v30 = vld [vmem:[%s3758_s12 + $0x98] ss:$24 sps:$4 sm:$0xff]   ;;  %v3235_v33 = vld [vmem:[%s3758_s12 + $0xd4] ss:$24 sps:$4 sm:$0xff]  }
  0xb1   : > { %1381 = vmatmul.mubr.bf16.gmra.mrb[4].mxu0 %v3143_v31  ;;  %1445 = vmatmul.mubr.bf16.gmra.mrb[4].mxu1 %v3144_v32  ;;  %v3232_v31 = vld [vmem:[%s3758_s12 + $0xa0] ss:$24 sps:$4 sm:$0xff]   ;;  %v3233_v32 = vld [vmem:[%s3758_s12 + $0xcc] ss:$24 sps:$4 sm:$0xff]  }
  0xb2   : > { %1388 = vmatprep.mubr.bf16.mxu0 %v3149_v34  ;;  %1452 = vmatprep.mubr.bf16.mxu1 %v3151_v35  ;;  %v3237_v34 = vld [vmem:[%s3758_s12 + $0xc8] ss:$24 sps:$4 sm:$0xff]  }
  0xb3   : > { %2776 = vmatpush3.bf16.msra.mxu1 %v3156_v36  ;;  %2888 = vmatpush3.bf16.msra.mxu0 %v3158_v37  ;;  %v3238_v35 = vld [vmem:[%s3758_s12 + $0xd0] ss:$24 sps:$4 sm:$0xff]   ;;  %v3239_v36 = vld [vmem:[%s3758_s12 + $0xfc] ss:$24 sps:$4 sm:$0xff]  }
  0xb4   : > { %2777 = vmatprep.subr.bf16.mxu1 %v3165_v38  ;;  %2889 = vmatprep.subr.bf16.mxu0 %v3167_v39  ;;  %v3241_v37 = vld [vmem:[%s3758_s12 + $0x104] ss:$24 sps:$4 sm:$0xff]   ;;  %v3243_v38 = vld [vmem:[%s3758_s12 + $0xf8] ss:$24 sps:$4 sm:$0xff]  }
  0xb5   : > { %v3244_v39 = vld [vmem:[%s3758_s12 + $0x100] ss:$24 sps:$4 sm:$0xff]  }
  0xb7   : > { %2778 = vmatpush3.bf16.msra.mxu1 %v3166_v42  ;;  %2890 = vmatpush3.bf16.msra.mxu0 %v3168_v43  ;;  %v3249_v42 = vld [vmem:[%s3758_s12 + $0x128] ss:$24 sps:$4 sm:$0xff]  }
  0xb8   : > { %2779 = vmatprep.subr.bf16.mxu1 %v3175_v46  ;;  %2891 = vmatprep.subr.bf16.mxu0 %v3177_v48  ;;  %v3250_v43 = vld [vmem:[%s3758_s12 + $0x130] ss:$24 sps:$4 sm:$0xff]   ;;  %v3257_v48 = vld [vmem:[%s3758_s12 + $0x18c] ss:$24 sps:$4 sm:$0xff]  }
  0xb9   : > { %1389 = vmatmul.mubr.bf16.gmra.mrb[8].mxu0 %v3153_v40  ;;  %1453 = vmatmul.mubr.bf16.gmra.mrb[8].mxu1 %v3154_v41  ;;  %v3245_v40 = vld [vmem:[%s3758_s12 + $0x12c] ss:$24 sps:$4 sm:$0xff]   ;;  %v3255_v46 = vld [vmem:[%s3758_s12 + $0x158] ss:$24 sps:$4 sm:$0xff]  }
  0xba   : > { %1396 = vmatprep.mubr.bf16.mxu0 %v3159_v44  ;;  %1460 = vmatprep.mubr.bf16.mxu1 %v3161_v45  ;;  %v3247_v41 = vld [vmem:[%s3758_s12 + $0x134] ss:$24 sps:$4 sm:$0xff]   ;;  %v3253_v45 = vld [vmem:[%s3758_s12 + $0x164] ss:$24 sps:$4 sm:$0xff]  }
  0xbb   : > { %2780 = vmatpush3.bf16.msra.mxu1 %v3176_v47  ;;  %2892 = vmatpush3.bf16.msra.mxu0 %v3178_v49  ;;  %v3251_v44 = vld [vmem:[%s3758_s12 + $0x15c] ss:$24 sps:$4 sm:$0xff]   ;;  %v3256_v47 = vld [vmem:[%s3758_s12 + $0x160] ss:$24 sps:$4 sm:$0xff]  }
  0xbc   : > { %2781 = vmatprep.subr.bf16.mxu1 %v3185_v52  ;;  %2893 = vmatprep.subr.bf16.mxu0 %v3187_v56  ;;  %v3259_v49 = vld [vmem:[%s3758_s12 + $0x194] ss:$24 sps:$4 sm:$0xff]  }
  0xbd   : > { %v3263_v52 = vld [vmem:[%s3758_s12 + $0x1bc] ss:$24 sps:$4 sm:$0xff]   ;;  %v3269_v56 = vld [vmem:[%s3758_s12 + $0x1ec] ss:$24 sps:$4 sm:$0xff]  }
  0xbf   : > { %2782 = vmatpush3.bf16.msra.mxu1 %v3186_v55  ;;  %2894 = vmatpush3.bf16.msra.mxu0 %v3188_v57  ;;  %v3268_v55 = vld [vmem:[%s3758_s12 + $0x1c0] ss:$24 sps:$4 sm:$0xff]   ;;  %v3271_v57 = vld [vmem:[%s3758_s12 + $0x1f4] ss:$24 sps:$4 sm:$0xff]  }
  0xc0   : > { %2783 = vmatprep.subr.bf16.mxu1 %v3195_v58  ;;  %2895 = vmatprep.subr.bf16.mxu0 %v3197_v63  ;;  %v3273_v58 = vld [vmem:[%s3758_s12 + $0x1e8] ss:$24 sps:$4 sm:$0xff]  }
  0xc1   : > { %1397 = vmatmul.mubr.bf16.gmra.mrb[12].mxu0 %v3163_v50  ;;  %1461 = vmatmul.mubr.bf16.gmra.mrb[12].mxu1 %v3164_v51  ;;  %v3261_v50 = vld [vmem:[%s3758_s12 + $0x188] ss:$24 sps:$4 sm:$0xff]  }
  0xc2   : > { %1404 = vmatprep.mubr.bf16.mxu0 %v3169_v53  ;;  %1468 = vmatprep.mubr.bf16.mxu1 %v3171_v54  ;;  %v3262_v51 = vld [vmem:[%s3758_s12 + $0x190] ss:$24 sps:$4 sm:$0xff]   ;;  %v3265_v53 = vld [vmem:[%s3758_s12 + $0x1c4] ss:$24 sps:$4 sm:$0xff]   ;;  %v3280_v63 = vld [vmem:[%s3758_s12 + $0x220] ss:$24 sps:$4 sm:$0xff]  }
  0xc3   : > { %2784 = vmatpush3.bf16.msra.mxu1 %v3196_v61  ;;  %2896 = vmatpush3.bf16.msra.mxu0 %v3198_v0  ;;  %v3267_v54 = vld [vmem:[%s3758_s12 + $0x1b8] ss:$24 sps:$4 sm:$0xff]   ;;  %v3277_v61 = vld [vmem:[%s3758_s12 + $0x224] ss:$24 sps:$4 sm:$0xff]  }
  0xc4   : > { %2785 = vmatprep.subr.bf16.mxu1 %v3205_v2  ;;  %2897 = vmatprep.subr.bf16.mxu0 %v3207_v4  ;;  %v3281_v0 = vld [vmem:[%s3758_s12 + $0x24c] ss:$24 sps:$4 sm:$0xff]   ;;  %v3285_v2 = vld [vmem:[%s3758_s12 + $0x248] ss:$24 sps:$4 sm:$0xff]   ;;  %v3287_v4 = vld [vmem:[%s3758_s12 + $0x27c] ss:$24 sps:$4 sm:$0xff]  }
  0xc7   : > { %2786 = vmatpush3.bf16.msra.mxu1 %v3206_v3  ;;  %2898 = vmatpush3.bf16.msra.mxu0 %v3208_v5  ;;  %v3286_v3 = vld [vmem:[%s3758_s12 + $0x250] ss:$24 sps:$4 sm:$0xff]   ;;  %v3289_v5 = vld [vmem:[%s3758_s12 + $0x284] ss:$24 sps:$4 sm:$0xff]  }
  0xc9   : > { %1405 = vmatmul.mubr.bf16.gmra.mrb[16].mxu0 %v3173_v59  ;;  %1469 = vmatmul.mubr.bf16.gmra.mrb[16].mxu1 %v3174_v60  ;;  %v3274_v59 = vld [vmem:[%s3758_s12 + $0x1f0] ss:$24 sps:$4 sm:$0xff]   ;;  %v3275_v60 = vld [vmem:[%s3758_s12 + $0x21c] ss:$24 sps:$4 sm:$0xff]  }
  0xca   : > { %1412 = vmatprep.mubr.bf16.mxu0 %v3179_v62  ;;  %1476 = vmatprep.mubr.bf16.mxu1 %v3181_v1  ;;  %v3279_v62 = vld [vmem:[%s3758_s12 + $0x218] ss:$24 sps:$4 sm:$0xff]   ;;  %v3283_v1 = vld [vmem:[%s3758_s12 + $0x254] ss:$24 sps:$4 sm:$0xff]  }
  0xd1   : > { %1413 = vmatmul.mubr.bf16.gmra.mrb[20].mxu0 %v3183_v6  ;;  %1477 = vmatmul.mubr.bf16.gmra.mrb[20].mxu1 %v3184_v7  ;;  %v3291_v6 = vld [vmem:[%s3758_s12 + $0x278] ss:$24 sps:$4 sm:$0xff]  }
  0xd2   : > { %1420 = vmatprep.mubr.bf16.mxu0 %v3189_v8  ;;  %1484 = vmatprep.mubr.bf16.mxu1 %v3191_v9  ;;  %v3292_v7 = vld [vmem:[%s3758_s12 + $0x280] ss:$24 sps:$4 sm:$0xff]   ;;  %v3293_v8 = vld [vmem:[%s3758_s12 + $0x2ac] ss:$24 sps:$4 sm:$0xff]  }
  0xd3   : > { %v3295_v9 = vld [vmem:[%s3758_s12 + $0x2b4] ss:$24 sps:$4 sm:$0xff]  }
  0xd9   : > { %1421 = vmatmul.mubr.bf16.gmra.mrb[24].mxu0 %v3193_v10  ;;  %1485 = vmatmul.mubr.bf16.gmra.mrb[24].mxu1 %v3194_v11  ;;  %v3297_v10 = vld [vmem:[%s3758_s12 + $0x2a8] ss:$24 sps:$4 sm:$0xff]  }
  0xda   : > { %1428 = vmatprep.mubr.bf16.mxu0 %v3199_v12  ;;  %1492 = vmatprep.mubr.bf16.mxu1 %v3201_v13  ;;  %v3298_v11 = vld [vmem:[%s3758_s12 + $0x2b0] ss:$24 sps:$4 sm:$0xff]   ;;  %v3299_v12 = vld [vmem:[%s3758_s12 + $0x2dc] ss:$24 sps:$4 sm:$0xff]  }
  0xdb   : > { %v3301_v13 = vld [vmem:[%s3758_s12 + $0x2e4] ss:$24 sps:$4 sm:$0xff]  }
  0xe1   : > { %1429 = vmatmul.mubr.bf16.gmra.mrb[28].mxu0 %v3203_v14  ;;  %1493 = vmatmul.mubr.bf16.gmra.mrb[28].mxu1 %v3204_v15  ;;  %v3303_v14 = vld [vmem:[%s3758_s12 + $0x2d8] ss:$24 sps:$4 sm:$0xff]  }
  0xe2   : > { %1533 = vmatprep.mubr.bf16.mxu1 %v3211_v16  ;;  %1694 = vmatprep.mubr.bf16.mxu0 %v3214_v17  ;;  %v3304_v15 = vld [vmem:[%s3758_s12 + $0x2e0] ss:$24 sps:$4 sm:$0xff]  }
  0xe9   : > { %1534 = vmatmul.mubr.bf16.vlgmr.msra.gmra.mrb[32].mxu1 %v3209_v18  ;;  %1695 = vmatmul.mubr.bf16.vlgmr.msra.gmra.mrb[32].mxu0 %v3212_v19 }
  0xea   : > { %1541 = vmatprep.mubr.bf16.mxu1 %v3215_v20  ;;  %1702 = vmatprep.mubr.bf16.mxu0 %v3217_v21 }
  0xf1   : > { %1542 = vmatmul.mubr.bf16.gmra.mrb[36].mxu1 %v3219_v22  ;;  %1703 = vmatmul.mubr.bf16.gmra.mrb[36].mxu0 %v3220_v23 }
  0xf2   : > { %1549 = vmatprep.mubr.bf16.mxu1 %v3221_v24  ;;  %1710 = vmatprep.mubr.bf16.mxu0 %v3223_v25 }
  0xf9   : > { %1550 = vmatmul.mubr.bf16.gmra.mrb[40].mxu1 %v3225_v26  ;;  %1711 = vmatmul.mubr.bf16.gmra.mrb[40].mxu0 %v3226_v27 }
  0xfa   : > { %1557 = vmatprep.mubr.bf16.mxu1 %v3227_v28  ;;  %1718 = vmatprep.mubr.bf16.mxu0 %v3229_v29 }
 0x101   : > { %1558 = vmatmul.mubr.bf16.gmra.mrb[44].mxu1 %v3231_v30  ;;  %1719 = vmatmul.mubr.bf16.gmra.mrb[44].mxu0 %v3232_v31 }
 0x102   : > { %1565 = vmatprep.mubr.bf16.mxu1 %v3233_v32  ;;  %1726 = vmatprep.mubr.bf16.mxu0 %v3235_v33 }
 0x109   : > { %1566 = vmatmul.mubr.bf16.gmra.mrb[48].mxu1 %v3237_v34  ;;  %1727 = vmatmul.mubr.bf16.gmra.mrb[48].mxu0 %v3238_v35 }
 0x10a   : > { %1573 = vmatprep.mubr.bf16.mxu1 %v3239_v36  ;;  %1734 = vmatprep.mubr.bf16.mxu0 %v3241_v37 }
 0x111   : > { %1574 = vmatmul.mubr.bf16.gmra.mrb[52].mxu1 %v3243_v38  ;;  %1735 = vmatmul.mubr.bf16.gmra.mrb[52].mxu0 %v3244_v39 }
 0x112   : > { %1581 = vmatprep.mubr.bf16.mxu1 %v3245_v40  ;;  %1742 = vmatprep.mubr.bf16.mxu0 %v3247_v41 }
 0x119   : > { %1582 = vmatmul.mubr.bf16.gmra.mrb[56].mxu1 %v3249_v42  ;;  %1743 = vmatmul.mubr.bf16.gmra.mrb[56].mxu0 %v3250_v43 }
 0x11a   : > { %1589 = vmatprep.mubr.bf16.mxu1 %v3251_v44  ;;  %1750 = vmatprep.mubr.bf16.mxu0 %v3253_v45 }
 0x121   : > { %1590 = vmatmul.mubr.bf16.gmra.mrb[60].mxu1 %v3255_v46  ;;  %1751 = vmatmul.mubr.bf16.gmra.mrb[60].mxu0 %v3256_v47 }
 0x122   : > { %1597 = vmatprep.mubr.bf16.mxu1 %v3257_v48  ;;  %1758 = vmatprep.mubr.bf16.mxu0 %v3259_v49 }
 0x129   : > { %1598 = vmatmul.mubr.bf16.gmra.mrb[64].mxu1 %v3261_v50  ;;  %1759 = vmatmul.mubr.bf16.gmra.mrb[64].mxu0 %v3262_v51 }
 0x12a   : > { %1605 = vmatprep.mubr.bf16.mxu1 %v3263_v52  ;;  %1766 = vmatprep.mubr.bf16.mxu0 %v3265_v53 }
 0x131   : > { %1606 = vmatmul.mubr.bf16.gmra.mrb[68].mxu1 %v3267_v54  ;;  %1767 = vmatmul.mubr.bf16.gmra.mrb[68].mxu0 %v3268_v55 }
 0x132   : > { %1613 = vmatprep.mubr.bf16.mxu1 %v3269_v56  ;;  %1774 = vmatprep.mubr.bf16.mxu0 %v3271_v57 }
 0x139   : > { %1614 = vmatmul.mubr.bf16.gmra.mrb[72].mxu1 %v3273_v58  ;;  %1775 = vmatmul.mubr.bf16.gmra.mrb[72].mxu0 %v3274_v59 }
 0x13a   : > { %1621 = vmatprep.mubr.bf16.mxu1 %v3275_v60  ;;  %1782 = vmatprep.mubr.bf16.mxu0 %v3277_v61 }
 0x141   : > { %1622 = vmatmul.mubr.bf16.gmra.mrb[76].mxu1 %v3279_v62  ;;  %1783 = vmatmul.mubr.bf16.gmra.mrb[76].mxu0 %v3280_v63 }
 0x142   : > { %1629 = vmatprep.mubr.bf16.mxu1 %v3281_v0  ;;  %1790 = vmatprep.mubr.bf16.mxu0 %v3283_v1 }
 0x149   : > { %1630 = vmatmul.mubr.bf16.gmra.mrb[80].mxu1 %v3285_v2  ;;  %1791 = vmatmul.mubr.bf16.gmra.mrb[80].mxu0 %v3286_v3 }
 0x14a   : > { %1637 = vmatprep.mubr.bf16.mxu1 %v3287_v4  ;;  %1798 = vmatprep.mubr.bf16.mxu0 %v3289_v5 }
 0x151   : > { %1638 = vmatmul.mubr.bf16.gmra.mrb[84].mxu1 %v3291_v6  ;;  %1799 = vmatmul.mubr.bf16.gmra.mrb[84].mxu0 %v3292_v7 }
 0x152   : > { %1645 = vmatprep.mubr.bf16.mxu1 %v3293_v8  ;;  %1806 = vmatprep.mubr.bf16.mxu0 %v3295_v9 }
 0x159   : > { %1646 = vmatmul.mubr.bf16.gmra.mrb[88].mxu1 %v3297_v10  ;;  %1807 = vmatmul.mubr.bf16.gmra.mrb[88].mxu0 %v3298_v11 }
 0x15a   : > { %1653 = vmatprep.mubr.bf16.mxu1 %v3299_v12  ;;  %1814 = vmatprep.mubr.bf16.mxu0 %v3301_v13 }
 0x161   : > { %1654 = vmatmul.mubr.bf16.gmra.mrb[92].mxu1 %v3303_v14  ;;  %1815 = vmatmul.mubr.bf16.gmra.mrb[92].mxu0 %v3304_v15 }
 0x17c   : > { %v2675_v16 = vpop.f32.mrb[0].mxu0  ;;  %v2723_v17 = vpop.f32.mrb[0].mxu1 }
 0x17d   : > { %v2676_v18 = vpop.f32.mrb[1].mxu0  ;;  %v2724_v19 = vpop.f32.mrb[1].mxu1 }
 0x17e   : > { %v3868_v20 = vadd.f32 %v2676_v18, %v2675_v16  ;;  %v3870_v21 = vadd.f32 %v2724_v19, %v2723_v17  ;;  %v2678_v22 = vpop.f32.mrb[2].mxu0  ;;  %v2726_v23 = vpop.f32.mrb[2].mxu1 }
 0x17f   : > { %v2679_v24 = vpop.f32.mrb[3].mxu0  ;;  %v2727_v25 = vpop.f32.mrb[3].mxu1 }
 0x180   : > { %v3872_v26 = vadd.f32 %v2679_v24, %v2678_v22  ;;  %v3874_v27 = vadd.f32 %v2727_v25, %v2726_v23 }
 0x184   : > { %v2681_v28 = vpop.f32.mrb[4].mxu0  ;;  %v2729_v29 = vpop.f32.mrb[4].mxu1 }
 0x185   : > { %v2682_v30 = vpop.f32.mrb[5].mxu0  ;;  %v2730_v31 = vpop.f32.mrb[5].mxu1 }
 0x186   : > { %v3876_v32 = vadd.f32 %v2682_v30, %v2681_v28  ;;  %v3878_v33 = vadd.f32 %v2730_v31, %v2729_v29  ;;  %v2684_v34 = vpop.f32.mrb[6].mxu0  ;;  %v2732_v35 = vpop.f32.mrb[6].mxu1 }
 0x187   : > { %v2685_v36 = vpop.f32.mrb[7].mxu0  ;;  %v2733_v37 = vpop.f32.mrb[7].mxu1 }
 0x188   : > { %v3880_v38 = vadd.f32 %v2685_v36, %v2684_v34  ;;  %v3882_v39 = vadd.f32 %v2733_v37, %v2732_v35 }
 0x18c   : > { %v2687_v40 = vpop.f32.mrb[8].mxu0  ;;  %v2735_v41 = vpop.f32.mrb[8].mxu1 }
 0x18d   : > { %v2688_v42 = vpop.f32.mrb[9].mxu0  ;;  %v2736_v43 = vpop.f32.mrb[9].mxu1 }
 0x18e   : > { %v3884_v44 = vadd.f32 %v2688_v42, %v2687_v40  ;;  %v3886_v45 = vadd.f32 %v2736_v43, %v2735_v41  ;;  %v2690_v46 = vpop.f32.mrb[10].mxu0  ;;  %v2738_v47 = vpop.f32.mrb[10].mxu1 }
 0x18f   : > { %v2691_v48 = vpop.f32.mrb[11].mxu0  ;;  %v2739_v49 = vpop.f32.mrb[11].mxu1 }
 0x190   : > { %v3888_v50 = vadd.f32 %v2691_v48, %v2690_v46  ;;  %v3890_v51 = vadd.f32 %v2739_v49, %v2738_v47 }
 0x194   : > { %v2693_v52 = vpop.f32.mrb[12].mxu0  ;;  %v2741_v53 = vpop.f32.mrb[12].mxu1 }
 0x195   : > { %v2694_v54 = vpop.f32.mrb[13].mxu0  ;;  %v2742_v55 = vpop.f32.mrb[13].mxu1 }
 0x196   : > { %v3892_v56 = vadd.f32 %v2694_v54, %v2693_v52  ;;  %v3894_v57 = vadd.f32 %v2742_v55, %v2741_v53  ;;  %v2696_v58 = vpop.f32.mrb[14].mxu0  ;;  %v2744_v59 = vpop.f32.mrb[14].mxu1 }
 0x197   : > { %v2697_v60 = vpop.f32.mrb[15].mxu0  ;;  %v2745_v61 = vpop.f32.mrb[15].mxu1 }
 0x198   : > { %v3896_v62 = vadd.f32 %v2697_v60, %v2696_v58  ;;  %v3898_v63 = vadd.f32 %v2745_v61, %v2744_v59 }
 0x19c   : > { %v2699_v0 = vpop.f32.mrb[16].mxu0  ;;  %v2747_v1 = vpop.f32.mrb[16].mxu1 }
 0x19d   : > { %v2700_v2 = vpop.f32.mrb[17].mxu0  ;;  %v2748_v3 = vpop.f32.mrb[17].mxu1 }
 0x19e   : > { %v3900_v4 = vadd.f32 %v2700_v2, %v2699_v0  ;;  %v3902_v5 = vadd.f32 %v2748_v3, %v2747_v1  ;;  %v2702_v6 = vpop.f32.mrb[18].mxu0  ;;  %v2750_v7 = vpop.f32.mrb[18].mxu1 }
 0x19f   : > { %v2703_v8 = vpop.f32.mrb[19].mxu0  ;;  %v2751_v9 = vpop.f32.mrb[19].mxu1 }
 0x1a0   : > { %v3904_v10 = vadd.f32 %v2703_v8, %v2702_v6  ;;  %v3906_v11 = vadd.f32 %v2751_v9, %v2750_v7 }
 0x1a4   : > { %v2705_v12 = vpop.f32.mrb[20].mxu0  ;;  %v2753_v13 = vpop.f32.mrb[20].mxu1 }
 0x1a5   : > { %v2706_v14 = vpop.f32.mrb[21].mxu0  ;;  %v2754_v15 = vpop.f32.mrb[21].mxu1 }
 0x1a6   : > { %v3908_v16 = vadd.f32 %v2706_v14, %v2705_v12  ;;  %v3910_v17 = vadd.f32 %v2754_v15, %v2753_v13  ;;  %v2708_v18 = vpop.f32.mrb[22].mxu0  ;;  %v2756_v19 = vpop.f32.mrb[22].mxu1 }
 0x1a7   : > { %v2709_v22 = vpop.f32.mrb[23].mxu0  ;;  %v2757_v23 = vpop.f32.mrb[23].mxu1 }
 0x1a8   : > { %v3912_v24 = vadd.f32 %v2709_v22, %v2708_v18  ;;  %v3914_v25 = vadd.f32 %v2757_v23, %v2756_v19  ;;  %v3933_v19 = vld [vmem:[#allocation8] ss:$0 sm:$0xff] }
 0x1ac   : > { %v2711_v28 = vpop.f32.mrb[24].mxu0  ;;  %v2759_v29 = vpop.f32.mrb[24].mxu1 }
 0x1ad   : > { %v2712_v30 = vpop.f32.mrb[25].mxu0  ;;  %v2760_v31 = vpop.f32.mrb[25].mxu1 }
 0x1ae   : > { %v3916_v34 = vadd.f32 %v2712_v30, %v2711_v28  ;;  %v3918_v35 = vadd.f32 %v2760_v31, %v2759_v29  ;;  %v2714_v36 = vpop.f32.mrb[26].mxu0  ;;  %v2762_v37 = vpop.f32.mrb[26].mxu1  ;;  %v3936_v28 = vld [vmem:[#allocation9] ss:$0 sm:$0xff] }
 0x1af   : > { %v2715_v40 = vpop.f32.mrb[27].mxu0  ;;  %v2763_v41 = vpop.f32.mrb[27].mxu1 }
 0x1b0   : > { %v3920_v42 = vadd.f32 %v2715_v40, %v2714_v36  ;;  %v3922_v43 = vadd.f32 %v2763_v41, %v2762_v37 }
 0x1b4   : > { %v2717_v46 = vpop.f32.mrb[28].mxu0  ;;  %v2765_v47 = vpop.f32.mrb[28].mxu1 }
 0x1b5   : > { %v2718_v48 = vpop.f32.mrb[29].mxu0  ;;  %v2766_v49 = vpop.f32.mrb[29].mxu1 }
 0x1b6   : > { %v3924_v52 = vadd.f32 %v2718_v48, %v2717_v46  ;;  %v3926_v53 = vadd.f32 %v2766_v49, %v2765_v47  ;;  %v2720_v54 = vpop.f32.mrb[30].mxu0  ;;  %v2768_v55 = vpop.f32.mrb[30].mxu1 }
 0x1b7   : > { %v2721_v58 = vpop.f32.mrb[31].mxu0  ;;  %v2769_v59 = vpop.f32.mrb[31].mxu1 }
 0x1b8   : > { %v3928_v60 = vadd.f32 %v2721_v58, %v2720_v54  ;;  %v3930_v61 = vadd.f32 %v2769_v59, %v2768_v55 }
 0x1bc   : > { %v2787_v0 = vpop.f32.mrb[32].mxu1  ;;  %v2899_v1 = vpop.f32.mrb[32].mxu0 }
 0x1bd   : > { %v2788_v2 = vpop.f32.mrb[33].mxu1  ;;  %v2900_v3 = vpop.f32.mrb[33].mxu0 }
 0x1be   : > { %v2789_v6 = vadd.f32 %v2788_v2, %v2787_v0  ;;  %v2901_v7 = vadd.f32 %v2900_v3, %v2899_v1  ;;  %v2790_v8 = vpop.f32.mrb[34].mxu1  ;;  %v2902_v9 = vpop.f32.mrb[34].mxu0 }
 0x1bf   : > { %v2791_v12 = vpop.f32.mrb[35].mxu1  ;;  %v2903_v13 = vpop.f32.mrb[35].mxu0 }
 0x1c0   : > { %v1536_v14 = vadd.f32 %v2789_v6, %v3868_v20  ;;  %v2792_v15 = vadd.f32 %v2791_v12, %v2790_v8  ;;  %v2904_v18 = vadd.f32 %v2903_v13, %v2902_v9 }
 0x1c2   : > { %v1697_v22 = vadd.f32 %v2901_v7, %v1536_v14  ;;  %v1539_v23 = vadd.f32 %v2792_v15, %v3872_v26 }
 0x1c4   : > { %v1929_v29 = vmul.f32 %v3933_v19, %v1697_v22  ;;  %v1700_v30 = vadd.f32 %v2904_v18, %v1539_v23  ;;  %v2793_v31 = vpop.f32.mrb[36].mxu1  ;;  %v2905_v36 = vpop.f32.mrb[36].mxu0 }
 0x1c5   : > { %v2794_v37 = vpop.f32.mrb[37].mxu1  ;;  %v2906_v40 = vpop.f32.mrb[37].mxu0 }
 0x1c6   : > { %v1968_v41 = vadd.f32 %v3936_v28, %v1929_v29  ;;  %v1930_v20 = vmul.f32 %v3933_v19, %v1700_v30  ;;  %v2795_v46 = vadd.f32 %v2794_v37, %v2793_v31  ;;  %v2907_v47 = vadd.f32 %v2906_v40, %v2905_v36  ;;  %v2796_v48 = vpop.f32.mrb[38].mxu1  ;;  %v2908_v49 = vpop.f32.mrb[38].mxu0 }
 0x1c7   : > { %v2797_v54 = vpop.f32.mrb[39].mxu1  ;;  %v2909_v26 = vpop.f32.mrb[39].mxu0 }
 0x1c8   : > { %v1969_v55 = vadd.f32 %v3936_v28, %v1930_v20  ;;  %v1544_v58 = vadd.f32 %v2795_v46, %v3876_v32  ;;  %v2798_v59 = vadd.f32 %v2797_v54, %v2796_v48  ;;  %v2910_v0 = vadd.f32 %v2909_v26, %v2908_v49 }
 0x1c9   : > { %v2000_v1 = vmax.f32 %v1968_v41, 0.0 }
 0x1ca   : > { %v2001_v2 = vmax.f32 %v1969_v55, 0.0  ;;  %v1705_v3 = vadd.f32 %v2907_v47, %v1544_v58  ;;  %v1547_v6 = vadd.f32 %v2798_v59, %v3880_v38 }
 0x1cc   : > { %v2567_v7 = vpack.c.bf16 %v2001_v2, %v2000_v1  ;;  %v1931_v8 = vmul.f32 %v3933_v19, %v1705_v3  ;;  %v1708_v9 = vadd.f32 %v2910_v0, %v1547_v6  ;;  %v2799_v12 = vpop.f32.mrb[40].mxu1  ;;  %v2911_v13 = vpop.f32.mrb[40].mxu0 }
 0x1cd   : > { %v2800_v14 = vpop.f32.mrb[41].mxu1  ;;  %v2912_v15 = vpop.f32.mrb[41].mxu0 }
 0x1ce   : > { %2568 = vst [vmem:[%s3946_s25] sm:$0xff] %v2567_v7   ;;  %v1970_v32 = vadd.f32 %v3936_v28, %v1931_v8  ;;  %v1932_v18 = vmul.f32 %v3933_v19, %v1708_v9  ;;  %v2801_v22 = vadd.f32 %v2800_v14, %v2799_v12  ;;  %v2913_v23 = vadd.f32 %v2912_v15, %v2911_v13  ;;  %v2802_v29 = vpop.f32.mrb[42].mxu1  ;;  %v2914_v38 = vpop.f32.mrb[42].mxu0 }
 0x1cf   : > { %v2803_v30 = vpop.f32.mrb[43].mxu1  ;;  %v2915_v31 = vpop.f32.mrb[43].mxu0 }
 0x1d0   : > { %v1971_v36 = vadd.f32 %v3936_v28, %v1932_v18  ;;  %v1552_v37 = vadd.f32 %v2801_v22, %v3884_v44  ;;  %v2804_v40 = vadd.f32 %v2803_v30, %v2802_v29  ;;  %v2916_v41 = vadd.f32 %v2915_v31, %v2914_v38 }
 0x1d1   : > { %v2002_v20 = vmax.f32 %v1970_v32, 0.0 }
 0x1d2   : > { %v2003_v46 = vmax.f32 %v1971_v36, 0.0  ;;  %v1713_v47 = vadd.f32 %v2913_v23, %v1552_v37  ;;  %v1555_v48 = vadd.f32 %v2804_v40, %v3888_v50 }
 0x1d4   : > { %v2572_v49 = vpack.c.bf16 %v2003_v46, %v2002_v20  ;;  %v1933_v54 = vmul.f32 %v3933_v19, %v1713_v47  ;;  %v1716_v26 = vadd.f32 %v2916_v41, %v1555_v48  ;;  %v2805_v55 = vpop.f32.mrb[44].mxu1  ;;  %v2917_v58 = vpop.f32.mrb[44].mxu0 }
 0x1d5   : > { %v2806_v59 = vpop.f32.mrb[45].mxu1  ;;  %v2918_v0 = vpop.f32.mrb[45].mxu0 }
 0x1d6   : > { %2644 = vst [vmem:[%s3946_s25 + $0x8] sm:$0xff] %v2572_v49   ;;  %v1972_v1 = vadd.f32 %v3936_v28, %v1933_v54  ;;  %v1934_v44 = vmul.f32 %v3933_v19, %v1716_v26  ;;  %v2807_v2 = vadd.f32 %v2806_v59, %v2805_v55  ;;  %v2919_v3 = vadd.f32 %v2918_v0, %v2917_v58  ;;  %v2808_v6 = vpop.f32.mrb[46].mxu1  ;;  %v2920_v7 = vpop.f32.mrb[46].mxu0 }
 0x1d7   : > { %v2809_v8 = vpop.f32.mrb[47].mxu1  ;;  %v2921_v9 = vpop.f32.mrb[47].mxu0 }
 0x1d8   : > { %v1973_v50 = vadd.f32 %v3936_v28, %v1934_v44  ;;  %v1560_v12 = vadd.f32 %v2807_v2, %v3892_v56  ;;  %v2810_v13 = vadd.f32 %v2809_v8, %v2808_v6  ;;  %v2922_v14 = vadd.f32 %v2921_v9, %v2920_v7 }
 0x1d9   : > { %v2004_v15 = vmax.f32 %v1972_v1, 0.0 }
 0x1da   : > { %v2005_v32 = vmax.f32 %v1973_v50, 0.0  ;;  %v1721_v18 = vadd.f32 %v2919_v3, %v1560_v12  ;;  %v1563_v22 = vadd.f32 %v2810_v13, %v3896_v62 }
 0x1dc   : > { %v2577_v23 = vpack.c.bf16 %v2005_v32, %v2004_v15  ;;  %v1935_v29 = vmul.f32 %v3933_v19, %v1721_v18  ;;  %v1724_v38 = vadd.f32 %v2922_v14, %v1563_v22  ;;  %v2811_v30 = vpop.f32.mrb[48].mxu1  ;;  %v2923_v31 = vpop.f32.mrb[48].mxu0 }
 0x1dd   : > { %v2812_v36 = vpop.f32.mrb[49].mxu1  ;;  %v2924_v37 = vpop.f32.mrb[49].mxu0 }
 0x1de   : > { %2645 = vst [vmem:[%s3946_s25 + $0x10] sm:$0xff] %v2577_v23   ;;  %v1974_v40 = vadd.f32 %v3936_v28, %v1935_v29  ;;  %v1936_v56 = vmul.f32 %v3933_v19, %v1724_v38  ;;  %v2813_v41 = vadd.f32 %v2812_v36, %v2811_v30  ;;  %v2925_v20 = vadd.f32 %v2924_v37, %v2923_v31  ;;  %v2814_v46 = vpop.f32.mrb[50].mxu1  ;;  %v2926_v47 = vpop.f32.mrb[50].mxu0 }
 0x1df   : > { %v2815_v48 = vpop.f32.mrb[51].mxu1  ;;  %v2927_v49 = vpop.f32.mrb[51].mxu0 }
 0x1e0   : > { %v1975_v62 = vadd.f32 %v3936_v28, %v1936_v56  ;;  %v1568_v54 = vadd.f32 %v2813_v41, %v3900_v4  ;;  %v2816_v26 = vadd.f32 %v2815_v48, %v2814_v46  ;;  %v2928_v55 = vadd.f32 %v2927_v49, %v2926_v47 }
 0x1e1   : > { %v2006_v58 = vmax.f32 %v1974_v40, 0.0 }
 0x1e2   : > { %v2007_v59 = vmax.f32 %v1975_v62, 0.0  ;;  %v1729_v0 = vadd.f32 %v2925_v20, %v1568_v54  ;;  %v1571_v1 = vadd.f32 %v2816_v26, %v3904_v10 }
 0x1e4   : > { %v2582_v44 = vpack.c.bf16 %v2007_v59, %v2006_v58  ;;  %v1937_v2 = vmul.f32 %v3933_v19, %v1729_v0  ;;  %v1732_v3 = vadd.f32 %v2928_v55, %v1571_v1  ;;  %v2817_v6 = vpop.f32.mrb[52].mxu1  ;;  %v2929_v7 = vpop.f32.mrb[52].mxu0 }
 0x1e5   : > { %v2818_v8 = vpop.f32.mrb[53].mxu1  ;;  %v2930_v9 = vpop.f32.mrb[53].mxu0 }
 0x1e6   : > { %2646 = vst [vmem:[%s3946_s25 + $0x18] sm:$0xff] %v2582_v44   ;;  %v1976_v50 = vadd.f32 %v3936_v28, %v1937_v2  ;;  %v1938_v4 = vmul.f32 %v3933_v19, %v1732_v3  ;;  %v2819_v12 = vadd.f32 %v2818_v8, %v2817_v6  ;;  %v2931_v13 = vadd.f32 %v2930_v9, %v2929_v7  ;;  %v2820_v14 = vpop.f32.mrb[54].mxu1  ;;  %v2932_v15 = vpop.f32.mrb[54].mxu0 }
 0x1e7   : > { %v2821_v32 = vpop.f32.mrb[55].mxu1  ;;  %v2933_v18 = vpop.f32.mrb[55].mxu0 }
 0x1e8   : > { %v1977_v10 = vadd.f32 %v3936_v28, %v1938_v4  ;;  %v1576_v22 = vadd.f32 %v2819_v12, %v3908_v16  ;;  %v2822_v23 = vadd.f32 %v2821_v32, %v2820_v14  ;;  %v2934_v29 = vadd.f32 %v2933_v18, %v2932_v15 }
 0x1e9   : > { %v2008_v38 = vmax.f32 %v1976_v50, 0.0 }
 0x1ea   : > { %v2009_v30 = vmax.f32 %v1977_v10, 0.0  ;;  %v1737_v31 = vadd.f32 %v2931_v13, %v1576_v22  ;;  %v1579_v36 = vadd.f32 %v2822_v23, %v3912_v24 }
 0x1ec   : > { %v2587_v37 = vpack.c.bf16 %v2009_v30, %v2008_v38  ;;  %v1939_v40 = vmul.f32 %v3933_v19, %v1737_v31  ;;  %v1740_v56 = vadd.f32 %v2934_v29, %v1579_v36  ;;  %v2823_v41 = vpop.f32.mrb[56].mxu1  ;;  %v2935_v20 = vpop.f32.mrb[56].mxu0 }
 0x1ed   : > { %v2824_v46 = vpop.f32.mrb[57].mxu1  ;;  %v2936_v47 = vpop.f32.mrb[57].mxu0 }
 0x1ee   : > { %2647 = vst [vmem:[%s3946_s25 + $0x20] sm:$0xff] %v2587_v37   ;;  %v1978_v48 = vadd.f32 %v3936_v28, %v1939_v40  ;;  %v1940_v16 = vmul.f32 %v3933_v19, %v1740_v56  ;;  %v2825_v49 = vadd.f32 %v2824_v46, %v2823_v41  ;;  %v2937_v62 = vadd.f32 %v2936_v47, %v2935_v20  ;;  %v2826_v54 = vpop.f32.mrb[58].mxu1  ;;  %v2938_v26 = vpop.f32.mrb[58].mxu0 }
 0x1ef   : > { %v2827_v55 = vpop.f32.mrb[59].mxu1  ;;  %v2939_v58 = vpop.f32.mrb[59].mxu0 }
 0x1f0   : > { %v1979_v24 = vadd.f32 %v3936_v28, %v1940_v16  ;;  %v1584_v59 = vadd.f32 %v2825_v49, %v3916_v34  ;;  %v2828_v0 = vadd.f32 %v2827_v55, %v2826_v54  ;;  %v2940_v1 = vadd.f32 %v2939_v58, %v2938_v26 }
 0x1f1   : > { %v2010_v44 = vmax.f32 %v1978_v48, 0.0 }
 0x1f2   : > { %v2011_v2 = vmax.f32 %v1979_v24, 0.0  ;;  %v1745_v3 = vadd.f32 %v2937_v62, %v1584_v59  ;;  %v1587_v6 = vadd.f32 %v2828_v0, %v3920_v42 }
 0x1f4   : > { %v2592_v7 = vpack.c.bf16 %v2011_v2, %v2010_v44  ;;  %v1941_v8 = vmul.f32 %v3933_v19, %v1745_v3  ;;  %v1748_v9 = vadd.f32 %v2940_v1, %v1587_v6  ;;  %v2829_v50 = vpop.f32.mrb[60].mxu1  ;;  %v2941_v4 = vpop.f32.mrb[60].mxu0 }
 0x1f5   : > { %v2830_v12 = vpop.f32.mrb[61].mxu1  ;;  %v2942_v13 = vpop.f32.mrb[61].mxu0 }
 0x1f6   : > { %2648 = vst [vmem:[%s3946_s25 + $0x28] sm:$0xff] %v2592_v7   ;;  %v1980_v14 = vadd.f32 %v3936_v28, %v1941_v8  ;;  %v1942_v34 = vmul.f32 %v3933_v19, %v1748_v9  ;;  %v2831_v15 = vadd.f32 %v2830_v12, %v2829_v50  ;;  %v2943_v32 = vadd.f32 %v2942_v13, %v2941_v4  ;;  %v2832_v18 = vpop.f32.mrb[62].mxu1  ;;  %v2944_v10 = vpop.f32.mrb[62].mxu0 }
 0x1f7   : > { %v2833_v22 = vpop.f32.mrb[63].mxu1  ;;  %v2945_v23 = vpop.f32.mrb[63].mxu0 }
 0x1f8   : > { %v1981_v42 = vadd.f32 %v3936_v28, %v1942_v34  ;;  %v1592_v29 = vadd.f32 %v2831_v15, %v3924_v52  ;;  %v2834_v38 = vadd.f32 %v2833_v22, %v2832_v18  ;;  %v2946_v30 = vadd.f32 %v2945_v23, %v2944_v10 }
 0x1f9   : > { %v2012_v31 = vmax.f32 %v1980_v14, 0.0 }
 0x1fa   : > { %v2013_v36 = vmax.f32 %v1981_v42, 0.0  ;;  %v1753_v37 = vadd.f32 %v2943_v32, %v1592_v29  ;;  %v1595_v40 = vadd.f32 %v2834_v38, %v3928_v60 }
 0x1fc   : > { %v2597_v56 = vpack.c.bf16 %v2013_v36, %v2012_v31  ;;  %v1943_v41 = vmul.f32 %v3933_v19, %v1753_v37  ;;  %v1756_v20 = vadd.f32 %v2946_v30, %v1595_v40  ;;  %v2835_v46 = vpop.f32.mrb[64].mxu1  ;;  %v2947_v47 = vpop.f32.mrb[64].mxu0 }
 0x1fd   : > { %v2836_v48 = vpop.f32.mrb[65].mxu1  ;;  %v2948_v16 = vpop.f32.mrb[65].mxu0 }
 0x1fe   : > { %2649 = vst [vmem:[%s3946_s25 + $0x30] sm:$0xff] %v2597_v56   ;;  %v1982_v49 = vadd.f32 %v3936_v28, %v1943_v41  ;;  %v1944_v52 = vmul.f32 %v3933_v19, %v1756_v20  ;;  %v2837_v62 = vadd.f32 %v2836_v48, %v2835_v46  ;;  %v2949_v54 = vadd.f32 %v2948_v16, %v2947_v47  ;;  %v2838_v26 = vpop.f32.mrb[66].mxu1  ;;  %v2950_v55 = vpop.f32.mrb[66].mxu0 }
 0x1ff   : > { %v2839_v58 = vpop.f32.mrb[67].mxu1  ;;  %v2951_v24 = vpop.f32.mrb[67].mxu0 }
 0x200   : > { %v1983_v60 = vadd.f32 %v3936_v28, %v1944_v52  ;;  %v1600_v59 = vadd.f32 %v2837_v62, %v3870_v21  ;;  %v2840_v0 = vadd.f32 %v2839_v58, %v2838_v26  ;;  %v2952_v1 = vadd.f32 %v2951_v24, %v2950_v55 }
 0x201   : > { %v2014_v44 = vmax.f32 %v1982_v49, 0.0 }
 0x202   : > { %v2015_v2 = vmax.f32 %v1983_v60, 0.0  ;;  %v1761_v3 = vadd.f32 %v2949_v54, %v1600_v59  ;;  %v1603_v6 = vadd.f32 %v2840_v0, %v3874_v27 }
 0x204   : > { %v2602_v7 = vpack.c.bf16 %v2015_v2, %v2014_v44  ;;  %v1945_v8 = vmul.f32 %v3933_v19, %v1761_v3  ;;  %v1764_v9 = vadd.f32 %v2952_v1, %v1603_v6  ;;  %v2841_v50 = vpop.f32.mrb[68].mxu1  ;;  %v2953_v4 = vpop.f32.mrb[68].mxu0 }
 0x205   : > { %v2842_v12 = vpop.f32.mrb[69].mxu1  ;;  %v2954_v13 = vpop.f32.mrb[69].mxu0 }
 0x206   : > { %2650 = vst [vmem:[%s3946_s25 + $0x38] sm:$0xff] %v2602_v7   ;;  %v1984_v14 = vadd.f32 %v3936_v28, %v1945_v8  ;;  %v1946_v21 = vmul.f32 %v3933_v19, %v1764_v9  ;;  %v2843_v34 = vadd.f32 %v2842_v12, %v2841_v50  ;;  %v2955_v15 = vadd.f32 %v2954_v13, %v2953_v4  ;;  %v2844_v32 = vpop.f32.mrb[70].mxu1  ;;  %v2956_v18 = vpop.f32.mrb[70].mxu0 }
 0x207   : > { %v2845_v10 = vpop.f32.mrb[71].mxu1  ;;  %v2957_v22 = vpop.f32.mrb[71].mxu0 }
 0x208   : > { %v1985_v27 = vadd.f32 %v3936_v28, %v1946_v21  ;;  %v1608_v23 = vadd.f32 %v2843_v34, %v3878_v33  ;;  %v2846_v42 = vadd.f32 %v2845_v10, %v2844_v32  ;;  %v2958_v29 = vadd.f32 %v2957_v22, %v2956_v18 }
 0x209   : > { %v2016_v38 = vmax.f32 %v1984_v14, 0.0 }
 0x20a   : > { %v2017_v30 = vmax.f32 %v1985_v27, 0.0  ;;  %v1769_v31 = vadd.f32 %v2955_v15, %v1608_v23  ;;  %v1611_v36 = vadd.f32 %v2846_v42, %v3882_v39 }
 0x20c   : > { %v2607_v37 = vpack.c.bf16 %v2017_v30, %v2016_v38  ;;  %v1947_v40 = vmul.f32 %v3933_v19, %v1769_v31  ;;  %v1772_v56 = vadd.f32 %v2958_v29, %v1611_v36  ;;  %v2847_v41 = vpop.f32.mrb[72].mxu1  ;;  %v2959_v20 = vpop.f32.mrb[72].mxu0 }
 0x20d   : > { %v2848_v46 = vpop.f32.mrb[73].mxu1  ;;  %v2960_v47 = vpop.f32.mrb[73].mxu0 }
 0x20e   : > { %2651 = vst [vmem:[%s3946_s25 + $0x40] sm:$0xff] %v2607_v37   ;;  %v1986_v48 = vadd.f32 %v3936_v28, %v1947_v40  ;;  %v1948_v33 = vmul.f32 %v3933_v19, %v1772_v56  ;;  %v2849_v16 = vadd.f32 %v2848_v46, %v2847_v41  ;;  %v2961_v49 = vadd.f32 %v2960_v47, %v2959_v20  ;;  %v2850_v52 = vpop.f32.mrb[74].mxu1  ;;  %v2962_v62 = vpop.f32.mrb[74].mxu0 }
 0x20f   : > { %v2851_v54 = vpop.f32.mrb[75].mxu1  ;;  %v2963_v26 = vpop.f32.mrb[75].mxu0 }
 0x210   : > { %v1987_v39 = vadd.f32 %v3936_v28, %v1948_v33  ;;  %v1616_v55 = vadd.f32 %v2849_v16, %v3886_v45  ;;  %v2852_v58 = vadd.f32 %v2851_v54, %v2850_v52  ;;  %v2964_v24 = vadd.f32 %v2963_v26, %v2962_v62 }
 0x211   : > { %v2018_v60 = vmax.f32 %v1986_v48, 0.0 }
 0x212   : > { %v2019_v59 = vmax.f32 %v1987_v39, 0.0  ;;  %v1777_v0 = vadd.f32 %v2961_v49, %v1616_v55  ;;  %v1619_v1 = vadd.f32 %v2852_v58, %v3890_v51 }
 0x214   : > { %v2612_v44 = vpack.c.bf16 %v2019_v59, %v2018_v60  ;;  %v1949_v2 = vmul.f32 %v3933_v19, %v1777_v0  ;;  %v1780_v3 = vadd.f32 %v2964_v24, %v1619_v1  ;;  %v2853_v6 = vpop.f32.mrb[76].mxu1  ;;  %v2965_v7 = vpop.f32.mrb[76].mxu0 }
 0x215   : > { %v2854_v8 = vpop.f32.mrb[77].mxu1  ;;  %v2966_v9 = vpop.f32.mrb[77].mxu0 }
 0x216   : > { %2652 = vst [vmem:[%s3946_s25 + $0x48] sm:$0xff] %v2612_v44   ;;  %v1988_v50 = vadd.f32 %v3936_v28, %v1949_v2  ;;  %v1950_v45 = vmul.f32 %v3933_v19, %v1780_v3  ;;  %v2855_v4 = vadd.f32 %v2854_v8, %v2853_v6  ;;  %v2967_v12 = vadd.f32 %v2966_v9, %v2965_v7  ;;  %v2856_v13 = vpop.f32.mrb[78].mxu1  ;;  %v2968_v14 = vpop.f32.mrb[78].mxu0 }
 0x217   : > { %v2857_v21 = vpop.f32.mrb[79].mxu1  ;;  %v2969_v34 = vpop.f32.mrb[79].mxu0 }
 0x218   : > { %v1989_v51 = vadd.f32 %v3936_v28, %v1950_v45  ;;  %v1624_v15 = vadd.f32 %v2855_v4, %v3894_v57  ;;  %v2858_v32 = vadd.f32 %v2857_v21, %v2856_v13  ;;  %v2970_v18 = vadd.f32 %v2969_v34, %v2968_v14 }
 0x219   : > { %v2020_v10 = vmax.f32 %v1988_v50, 0.0 }
 0x21a   : > { %v2021_v22 = vmax.f32 %v1989_v51, 0.0  ;;  %v1785_v27 = vadd.f32 %v2967_v12, %v1624_v15  ;;  %v1627_v23 = vadd.f32 %v2858_v32, %v3898_v63 }
 0x21c   : > { %v2617_v42 = vpack.c.bf16 %v2021_v22, %v2020_v10  ;;  %v1951_v29 = vmul.f32 %v3933_v19, %v1785_v27  ;;  %v1788_v38 = vadd.f32 %v2970_v18, %v1627_v23  ;;  %v2859_v30 = vpop.f32.mrb[80].mxu1  ;;  %v2971_v31 = vpop.f32.mrb[80].mxu0 }
 0x21d   : > { %v2860_v36 = vpop.f32.mrb[81].mxu1  ;;  %v2972_v37 = vpop.f32.mrb[81].mxu0 }
 0x21e   : > { %2653 = vst [vmem:[%s3946_s25 + $0x50] sm:$0xff] %v2617_v42   ;;  %v1990_v40 = vadd.f32 %v3936_v28, %v1951_v29  ;;  %v1952_v57 = vmul.f32 %v3933_v19, %v1788_v38  ;;  %v2861_v56 = vadd.f32 %v2860_v36, %v2859_v30  ;;  %v2973_v41 = vadd.f32 %v2972_v37, %v2971_v31  ;;  %v2862_v20 = vpop.f32.mrb[82].mxu1  ;;  %v2974_v46 = vpop.f32.mrb[82].mxu0 }
 0x21f   : > { %v2863_v47 = vpop.f32.mrb[83].mxu1  ;;  %v2975_v48 = vpop.f32.mrb[83].mxu0 }
 0x220   : > { %v1991_v63 = vadd.f32 %v3936_v28, %v1952_v57  ;;  %v1632_v33 = vadd.f32 %v2861_v56, %v3902_v5  ;;  %v2864_v16 = vadd.f32 %v2863_v47, %v2862_v20  ;;  %v2976_v49 = vadd.f32 %v2975_v48, %v2974_v46 }
 0x221   : > { %v2022_v52 = vmax.f32 %v1990_v40, 0.0 }
 0x222   : > { %v2023_v62 = vmax.f32 %v1991_v63, 0.0  ;;  %v1793_v54 = vadd.f32 %v2973_v41, %v1632_v33  ;;  %v1635_v26 = vadd.f32 %v2864_v16, %v3906_v11 }
 0x224   : > { %v2622_v39 = vpack.c.bf16 %v2023_v62, %v2022_v52  ;;  %v1953_v55 = vmul.f32 %v3933_v19, %v1793_v54  ;;  %v1796_v58 = vadd.f32 %v2976_v49, %v1635_v26  ;;  %v2865_v24 = vpop.f32.mrb[84].mxu1  ;;  %v2977_v60 = vpop.f32.mrb[84].mxu0 }
 0x225   : > { %v2866_v59 = vpop.f32.mrb[85].mxu1  ;;  %v2978_v0 = vpop.f32.mrb[85].mxu0 }
 0x226   : > { %2654 = vst [vmem:[%s3946_s25 + $0x58] sm:$0xff] %v2622_v39   ;;  %v1992_v1 = vadd.f32 %v3936_v28, %v1953_v55  ;;  %v1954_v5 = vmul.f32 %v3933_v19, %v1796_v58  ;;  %v2867_v44 = vadd.f32 %v2866_v59, %v2865_v24  ;;  %v2979_v2 = vadd.f32 %v2978_v0, %v2977_v60  ;;  %v2868_v3 = vpop.f32.mrb[86].mxu1  ;;  %v2980_v6 = vpop.f32.mrb[86].mxu0 }
 0x227   : > { %v2869_v7 = vpop.f32.mrb[87].mxu1  ;;  %v2981_v8 = vpop.f32.mrb[87].mxu0 }
 0x228   : > { %v1993_v11 = vadd.f32 %v3936_v28, %v1954_v5  ;;  %v1640_v9 = vadd.f32 %v2867_v44, %v3910_v17  ;;  %v2870_v50 = vadd.f32 %v2869_v7, %v2868_v3  ;;  %v2982_v45 = vadd.f32 %v2981_v8, %v2980_v6 }
 0x229   : > { %v2024_v4 = vmax.f32 %v1992_v1, 0.0 }
 0x22a   : > { %v2025_v12 = vmax.f32 %v1993_v11, 0.0  ;;  %v1801_v13 = vadd.f32 %v2979_v2, %v1640_v9  ;;  %v1643_v14 = vadd.f32 %v2870_v50, %v3914_v25 }
 0x22c   : > { %v2627_v21 = vpack.c.bf16 %v2025_v12, %v2024_v4  ;;  %v1955_v34 = vmul.f32 %v3933_v19, %v1801_v13  ;;  %v1804_v51 = vadd.f32 %v2982_v45, %v1643_v14  ;;  %v2871_v15 = vpop.f32.mrb[88].mxu1  ;;  %v2983_v32 = vpop.f32.mrb[88].mxu0 }
 0x22d   : > { %v2872_v18 = vpop.f32.mrb[89].mxu1  ;;  %v2984_v10 = vpop.f32.mrb[89].mxu0 }
 0x22e   : > { %2655 = vst [vmem:[%s3946_s25 + $0x60] sm:$0xff] %v2627_v21   ;;  %v1994_v22 = vadd.f32 %v3936_v28, %v1955_v34  ;;  %v1956_v17 = vmul.f32 %v3933_v19, %v1804_v51  ;;  %v2873_v27 = vadd.f32 %v2872_v18, %v2871_v15  ;;  %v2985_v23 = vadd.f32 %v2984_v10, %v2983_v32  ;;  %v2874_v42 = vpop.f32.mrb[90].mxu1  ;;  %v2986_v29 = vpop.f32.mrb[90].mxu0 }
 0x22f   : > { %v2875_v38 = vpop.f32.mrb[91].mxu1  ;;  %v2987_v30 = vpop.f32.mrb[91].mxu0 }
 0x230   : > { %v1995_v25 = vadd.f32 %v3936_v28, %v1956_v17  ;;  %v1648_v31 = vadd.f32 %v2873_v27, %v3918_v35  ;;  %v2876_v36 = vadd.f32 %v2875_v38, %v2874_v42  ;;  %v2988_v37 = vadd.f32 %v2987_v30, %v2986_v29 }
 0x231   : > { %v2026_v40 = vmax.f32 %v1994_v22, 0.0 }
 0x232   : > { %v2027_v57 = vmax.f32 %v1995_v25, 0.0  ;;  %v1809_v56 = vadd.f32 %v2985_v23, %v1648_v31  ;;  %v1651_v41 = vadd.f32 %v2876_v36, %v3922_v43 }
 0x234   : > { %v2632_v20 = vpack.c.bf16 %v2027_v57, %v2026_v40  ;;  %v1957_v46 = vmul.f32 %v3933_v19, %v1809_v56  ;;  %v1812_v47 = vadd.f32 %v2988_v37, %v1651_v41  ;;  %v2877_v48 = vpop.f32.mrb[92].mxu1  ;;  %v2989_v63 = vpop.f32.mrb[92].mxu0 }
 0x235   : > { %v2878_v33 = vpop.f32.mrb[93].mxu1  ;;  %v2990_v16 = vpop.f32.mrb[93].mxu0 }
 0x236   : > { %2656 = vst [vmem:[%s3946_s25 + $0x68] sm:$0xff] %v2632_v20   ;;  %v1996_v49 = vadd.f32 %v3936_v28, %v1957_v46  ;;  %v1958_v35 = vmul.f32 %v3933_v19, %v1812_v47  ;;  %v2879_v52 = vadd.f32 %v2878_v33, %v2877_v48  ;;  %v2991_v62 = vadd.f32 %v2990_v16, %v2989_v63  ;;  %v2880_v54 = vpop.f32.mrb[94].mxu1  ;;  %v2992_v26 = vpop.f32.mrb[94].mxu0 }
 0x237   : > { %v2881_v39 = vpop.f32.mrb[95].mxu1  ;;  %v2993_v43 = vpop.f32.mrb[95].mxu0 }
 0x238   : > { %v1997_v55 = vadd.f32 %v3936_v28, %v1958_v35  ;;  %v1656_v58 = vadd.f32 %v2879_v52, %v3926_v53  ;;  %v2882_v24 = vadd.f32 %v2881_v39, %v2880_v54  ;;  %v2994_v60 = vadd.f32 %v2993_v43, %v2992_v26 }
 0x239   : > { %v2028_v59 = vmax.f32 %v1996_v49, 0.0 }
 0x23a   : > { %v2029_v0 = vmax.f32 %v1997_v55, 0.0  ;;  %v1817_v1 = vadd.f32 %v2991_v62, %v1656_v58  ;;  %v1659_v5 = vadd.f32 %v2882_v24, %v3930_v61 }
 0x23c   : > { %v2637_v44 = vpack.c.bf16 %v2029_v0, %v2028_v59  ;;  %v1959_v2 = vmul.f32 %v3933_v19, %v1817_v1  ;;  %v1820_v3 = vadd.f32 %v2994_v60, %v1659_v5 }
 0x23e   : > { %2657 = vst [vmem:[%s3946_s25 + $0x70] sm:$0xff] %v2637_v44   ;;  %v1998_v6 = vadd.f32 %v3936_v28, %v1959_v2  ;;  %v1960_v7 = vmul.f32 %v3933_v19, %v1820_v3 }
 0x240   : > { %v1999_v53 = vadd.f32 %v3936_v28, %v1960_v7  ;;  %v2030_v8 = vmax.f32 %v1998_v6, 0.0 }
 0x242   : > { %v2031_v11 = vmax.f32 %v1999_v53, 0.0 }
 0x244   : > { %v2642_v61 = vpack.c.bf16 %v2031_v11, %v2030_v8 }
 0x246   : > { %2658 = vst [vmem:[%s3946_s25 + $0x78] sm:$0xff] %v2642_v61  }
 0x247   : > { %3432 = shalt.err (!%p3429_p13)
}
 0x248   : > { %s3433_s29 = scalar_lea.hbm %s4055_s6, 2048  ;;  %s3437_s10 = scalar_lea.hbm %s4110_s4, 200704 }
 0x249   : > { %p3434_p4 = scmp.ne.s32.totalorder %s4055_s6, %s3433_s29  ;;  %p3438_p11 = scmp.lt.u32.totalorder %s4055_s6, %s4110_s4 }
 0x24a   : > { %p3439_p1 = scmp.lt.u32.totalorder %s3437_s10, %s3433_s29  ;;  %p3441_p12 = scmp.lt.u32.totalorder %s3433_s29, %s4055_s6 }
 0x24b   : > { %p3435_p2 = pnand %p3434_p4, %p3698_p0 }
 0x24c   : > { %p3440_p10 = por %p3439_p1, %p3438_p11 }
 0x24d   : > { %p3436_p8 = pneg %p3435_p2 }
 0x24e   : > { %p3442_p6 = por %p3441_p12, %p3440_p10 }
 0x250   : > { %p3443_p3 = pnand %p3442_p6, %p3436_p8 }
 0x252   : > { %3446 = shalt.err (!%p3443_p3)
}
 0x253   : > { %s3520_s25 = smov 64   ;;  %s3521_s27 = smov 4  }
 0x254   : > { %3028 = dma.vmem_to_hbm [thread:$0]  (%p3698_p0), %s4057_s11, 2048, %s4055_s6, %s2193_s7, %s3520_s25, %s3520_s25, %s3521_s27  }
 0x255 PF: > { %s4130_s21 = sld [smem:[#allocation16_spill]]  ;;  %p3055_p5 = scmp.ge.s32.totalorder %s3509_s20, 2 }
 0x256   : > { %s2222_s28 = sand.u32 1, %s3489_s15  }
 0x257   : > { %s2223_s8 = scalar_lea.sflag [#allocation5], %s2222_s28 }
 0x25b   : > { %p4131_p7 = scmp.ne.s32.totalorder %s4130_s21, 0 }
 0x25d   : > { %p3045_p9 = pnand %p3055_p5, %p4131_p7 }
 0x25f   : > { %3484 = dma.done.wait (!%p3045_p9), %s2223_s8, 2048  }
 0x260   : > { %3486 = vsyncadd (!%p3045_p9), %s2223_s8, 4294965248  ;;  %s22_s20 = sadd.s32 1, %s3509_s20   ;;  %s4132_s15 = smov %s3493_s16 }
 0x261   : > { %p19_p13 = scmp.ge.s32.totalorder %s22_s20, 100   ;;  %s4133_s16 = smov %s3497_s17 }
 0x262   : > { %s4134_s17 = smov %s3714_s24  ;;  %s4135_s18 = smov %s3505_s19 }
 0x263   : > { %s4136_s19 = smov %s4138_s26  ;;  %21 = sbr.rel (!%p19_p13) target bundleno = 8 (0x8), region = 104 }
 0x26a   :  { %2228 = vsyncpa [#allocation4], 1 }
 0x26b   :  { %2230 = vsyncpa [#allocation4 + $0x1], 1 }
 0x26c   :  { %2231 = vsyncpa [#allocation7], 1 }
 0x26d   :  { %2232 = vsyncpa [#allocation10], 1 }
 0x26e   :  { %2233 = vsyncpa [#allocation5], 1 }
 0x26f   :  { %2235 = vsyncpa [#allocation5 + $0x1], 1 }

</bundles_post_ra>
